<compile_context>
chip_gen: v5e
topology: v5e:2x2
jax: 0.10.0
libtpu: 0.0.40
codegen_flags: <defaults>
</compile_context>

<pallas_src>
import functools

import jax
import jax.numpy as jnp
import numpy as np
from jax import lax
from jax.experimental import pallas as pl
from jax.experimental.pallas import tpu as pltpu

EPS = 1e-5            # nn.BatchNorm2d default eps
BF16_SUBLANE = 16     # sublane tile of a bf16 vreg


# ----------------------------------------------------------------------------
# pltpu.roll convention probe (portability guard): determine once, on the real
# backend, whether pltpu.roll follows the jnp.roll sign convention; fall back
# to zero-padded static lane slices if roll is unavailable.
# ----------------------------------------------------------------------------
def _roll_probe_kernel(x_ref, o_ref):
    o_ref[...] = pltpu.roll(x_ref[...], 1, axis=1)


@functools.lru_cache(maxsize=None)
def _pixel_shift_mode() -> str:
    try:
        x = jnp.broadcast_to(jnp.arange(128, dtype=jnp.float32), (8, 128))
        y = pl.pallas_call(
            _roll_probe_kernel,
            out_shape=jax.ShapeDtypeStruct((8, 128), jnp.float32),
        )(x)
        v = float(jax.device_get(y)[0, 0])
        if abs(v - 127.0) < 0.5:   # matches jnp.roll: y[:, 0] = x[:, -1]
            return "roll_np"
        if abs(v - 1.0) < 0.5:     # opposite rotation direction
            return "roll_flipped"
        return "slice"
    except Exception:
        return "slice"


def _vmem_limit_bytes() -> int:
    # Per-generation VMEM budget (v7x: 64 MiB physical, v5e/v6e: 128 MiB);
    # keep headroom below physical capacity.
    try:
        cap = int(pltpu.get_tpu_info().vmem_capacity_bytes)
        return min(cap * 3 // 4, 100 * 1024 * 1024)
    except Exception:
        return 32 * 1024 * 1024


# ----------------------------------------------------------------------------
# 4 host-precomputed edge-validity rows (0/1, exact in bf16):
#   row 0: h-1 valid (hh >= 1)      row 1: h+1 valid (hh <= H-2)
#   row 2: w-1 valid (ww >= 1)      row 3: w+1 valid (ww <= W-2)
# The per-tap mask is the product of the relevant rows; this also kills
# cross-image wrap-around reads of the lane-shifted taps.
# ----------------------------------------------------------------------------
def _edge_masks(N, H, W):
    pix = np.arange(N * H * W)
    hh = (pix % (H * W)) // W
    ww = pix % W
    return np.stack([hh >= 1, hh <= H - 2, ww >= 1, ww <= W - 2],
                    axis=0).astype(np.float32)        # (4, NHW)


# ----------------------------------------------------------------------------
# Fused kernel
# ----------------------------------------------------------------------------
def make_bottleneck_kernel(N, H, W, Cin, P, P_slot, shift_mode):
    NHW = N * H * W
    inv_nhw = 1.0 / NHW
    pad_rows = P_slot - P
    # slice-fallback margin, padded so the concatenated lane width stays a
    # multiple of 128 (NHW is already a multiple of 128)
    MARGIN = -(-(W + 1) // 64) * 64

    def pixel_shift(a, off):
        # b[:, i] = a[:, i + off]; out-of-range / wrapped lanes are garbage or
        # zero -- the per-tap edge masks zero every such contribution.
        if off == 0:
            return a
        if shift_mode == "roll_np":
            return pltpu.roll(a, (-off) % NHW, axis=1)
        if shift_mode == "roll_flipped":
            return pltpu.roll(a, off % NHW, axis=1)
        z = jnp.zeros((a.shape[0], MARGIN), a.dtype)
        ap = jnp.concatenate([z, a, z], axis=1)        # lane width 128-aligned
        return ap[:, MARGIN + off:MARGIN + off + NHW]

    def bn(y, gamma, beta):
        # Folded train-mode BatchNorm2d: one stats pass (E[y], E[y^2]) then a
        # single scale/shift apply; rsqrt runs on the EUP.
        # TODO(synk): at production NHW use per-tile partial sums + a shifted
        # two-pass variance to avoid E[y^2]-mu^2 cancellation.
        s1 = jnp.sum(y, axis=1, keepdims=True) * inv_nhw          # (C, 1)
        s2 = jnp.sum(y * y, axis=1, keepdims=True) * inv_nhw      # (C, 1)
        var = s2 - s1 * s1
        scale = gamma * lax.rsqrt(var + EPS)
        shift = beta - s1 * scale
        return y * scale + shift

    def kernel(x_ref, m_ref, w1_ref, g1_ref, b1_ref, w2_ref, g2_ref, b2_ref,
               w3_ref, g3_ref, b3_ref, o_ref, col_ref):
        x = x_ref[...]                                            # (Cin, NHW) f32
        m = m_ref[...].astype(jnp.float32)                        # (4, NHW)

        # ---- conv1 (1x1, no bias) + bn1 + relu (lane-dense) ----
        h1 = jnp.dot(w1_ref[...], x.astype(jnp.bfloat16),
                     preferred_element_type=jnp.float32)          # (P, NHW) f32
        h1 = jnp.maximum(bn(h1, g1_ref[...], b1_ref[...]), 0.0)

        # ---- conv2 (3x3, stride 1, pad 1): im2col -> single K=9*P_slot matmul
        zpad = (jnp.zeros((pad_rows, NHW), jnp.bfloat16) if pad_rows else None)
        for t in range(9):
            kh, kw = t // 3, t % 3
            dh, dw = kh - 1, kw - 1
            tap = pixel_shift(h1, dh * W + dw)
            if dh == -1:
                tap = tap * m[0:1, :]
            elif dh == 1:
                tap = tap * m[1:2, :]
            if dw == -1:
                tap = tap * m[2:3, :]
            elif dw == 1:
                tap = tap * m[3:4, :]
            slab = tap.astype(jnp.bfloat16)                       # (P, NHW) bf16
            if zpad is not None:
                slab = jnp.concatenate([slab, zpad], axis=0)      # (P_slot, NHW)
            col_ref[t * P_slot:(t + 1) * P_slot, :] = slab        # aligned, full-tile vst
        h2 = jnp.dot(w2_ref[...], col_ref[...],                   # bf16 x bf16 -> f32
                     preferred_element_type=jnp.float32)          # (P, NHW)
        h2 = jnp.maximum(bn(h2, g2_ref[...], b2_ref[...]), 0.0)

        # ---- conv3 (1x1, no bias) + bn3 + identity residual + relu ----
        h3 = jnp.dot(w3_ref[...], h2.astype(jnp.bfloat16),
                     preferred_element_type=jnp.float32)          # (Cout, NHW)
        h3 = bn(h3, g3_ref[...], b3_ref[...])
        o_ref[...] = jnp.maximum(h3 + x, 0.0)                     # lane-dense store

    return kernel


def bottleneck_forward(x_nchw, params):
    N, Cin, H, W = x_nchw.shape
    P = params["w1"].shape[1]
    Cout = 4 * P
    assert Cout == Cin, "downsample=None requires inplanes == planes * expansion"
    NHW = N * H * W
    assert NHW % 128 == 0, "pixel (lane) axis must be a multiple of 128"

    # sublane-aligned im2col slot height (bf16 tile = 16 sublanes)
    P_slot = -(-P // BF16_SUBLANE) * BF16_SUBLANE

    kernel = make_bottleneck_kernel(N, H, W, Cin, P, P_slot, _pixel_shift_mode())

    # lane-dense layout: channels on sublanes, pixels on lanes
    x_cm = jnp.transpose(x_nchw, (1, 0, 2, 3)).reshape(Cin, NHW).astype(jnp.float32)
    masks = jnp.asarray(_edge_masks(N, H, W)).astype(jnp.bfloat16)       # (4, NHW)

    # bf16 matmul operands (f32 accumulation inside the kernel)
    w1t = params["w1"].T.astype(jnp.bfloat16)                            # (P, Cin)
    w2_oti = jnp.transpose(params["w2"], (3, 0, 1, 2)).reshape(P, 9, P)  # (o, tap, i)
    w2t = jnp.pad(w2_oti, ((0, 0), (0, 0), (0, P_slot - P))
                  ).reshape(P, 9 * P_slot).astype(jnp.bfloat16)          # (P, 9*P_slot)
    w3t = params["w3"].T.astype(jnp.bfloat16)                            # (Cout, P)

    args = (
        x_cm, masks,
        w1t, params["g1"].reshape(P, 1), params["b1"].reshape(P, 1),
        w2t, params["g2"].reshape(P, 1), params["b2"].reshape(P, 1),
        w3t, params["g3"].reshape(Cout, 1), params["b3"].reshape(Cout, 1),
    )

    def full_spec(shape):
        return pl.BlockSpec(shape, lambda i, n=len(shape): (0,) * n)

    out_cm = pl.pallas_call(
        kernel,
        out_shape=jax.ShapeDtypeStruct((Cout, NHW), jnp.float32),
        grid=(1,),
        in_specs=[full_spec(a.shape) for a in args],
        out_specs=full_spec((Cout, NHW)),
        scratch_shapes=[pltpu.VMEM((9 * P_slot, NHW), jnp.bfloat16)],    # bf16 im2col
        compiler_params=pltpu.CompilerParams(
            dimension_semantics=("arbitrary",),
            vmem_limit_bytes=_vmem_limit_bytes(),
        ),
    )(*args)

    return jnp.transpose(out_cm.reshape(Cout, N, H, W), (1, 0, 2, 3))


# ----------------------------------------------------------------------------
# Parameters + pure-JAX reference
# ----------------------------------------------------------------------------
def init_params(key, inplanes, planes):
    exp = 4
    ks = jax.random.split(key, 9)
    w1 = jax.random.normal(ks[0], (inplanes, planes), jnp.float32) / jnp.sqrt(inplanes)
    w2 = jax.random.normal(ks[1], (3, 3, planes, planes), jnp.float32) / jnp.sqrt(9 * planes)
    w3 = jax.random.normal(ks[2], (planes, exp * planes), jnp.float32) / jnp.sqrt(planes)
    g1 = jax.random.uniform(ks[3], (planes,), jnp.float32, minval=0.5, maxval=1.5)
    b1 = 0.1 * jax.random.normal(ks[4], (planes,), jnp.float32)
    g2 = jax.random.uniform(ks[5], (planes,), jnp.float32, minval=0.5, maxval=1.5)
    b2 = 0.1 * jax.random.normal(ks[6], (planes,), jnp.float32)
    g3 = jax.random.uniform(ks[7], (exp * planes,), jnp.float32, minval=0.5, maxval=1.5)
    b3 = 0.1 * jax.random.normal(ks[8], (exp * planes,), jnp.float32)
    return dict(w1=w1, w2=w2, w3=w3, g1=g1, b1=b1, g2=g2, b2=b2, g3=g3, b3=b3)


def ref_bottleneck(x_nchw, p, conv_dtype=jnp.float32):
    """Pure-JAX reference (train-mode BN). conv_dtype models the matmul operand
    precision (bf16 on the MXU); accumulation is always f32."""
    x = jnp.transpose(x_nchw, (0, 2, 3, 1)).astype(jnp.float32)   # NHWC
    q = lambda a: a.astype(conv_dtype).astype(jnp.float32)

    def bn(y, g, b):
        mu = jnp.mean(y, axis=(0, 1, 2), keepdims=True)
        var = jnp.mean((y - mu) ** 2, axis=(0, 1, 2), keepdims=True)
        return (y - mu) * lax.rsqrt(var + EPS) * g + b

    h = jnp.einsum("nhwc,cd->nhwd", q(x), q(p["w1"]), precision=lax.Precision.HIGHEST)
    h = jax.nn.relu(bn(h, p["g1"], p["b1"]))
    h = lax.conv_general_dilated(q(h), q(p["w2"]), (1, 1), "SAME",
                                 dimension_numbers=("NHWC", "HWIO", "NHWC"),
                                 precision=lax.Precision.HIGHEST)
    h = jax.nn.relu(bn(h, p["g2"], p["b2"]))
    h = jnp.einsum("nhwc,cd->nhwd", q(h), q(p["w3"]), precision=lax.Precision.HIGHEST)
    h = jax.nn.relu(bn(h, p["g3"], p["b3"]) + x)
    return jnp.transpose(h, (0, 3, 1, 2))


if __name__ == "__main__":
    key = jax.random.PRNGKey(0)
    kx, kp = jax.random.split(key)

    # Bottleneck(inplanes=16, planes=4, stride=1, downsample=None)
    N, inplanes, H, W = 2, 16, 16, 16
    planes = 4  # expansion=4 -> out channels 16 == inplanes (identity residual)

    x = jax.random.normal(kx, (N, inplanes, H, W), jnp.float32)
    params = init_params(kp, inplanes, planes)

    out = jax.block_until_ready(bottleneck_forward(x, params))
    assert out.shape == (N, inplanes, H, W), out.shape

    # apples-to-apples check: reference convs also use bf16 operands / f32 accum
    ref_bf16 = ref_bottleneck(x, params, conv_dtype=jnp.bfloat16)
    err = float(jnp.max(jnp.abs(out - ref_bf16)))
    assert err < 3e-2, f"kernel vs bf16-operand reference: max abs err = {err}"

    # sanity check against the pure-f32 reference (looser: conv operands are bf16)
    ref_f32 = ref_bottleneck(x, params, conv_dtype=jnp.float32)
    err32 = float(jnp.max(jnp.abs(out - ref_f32)))
    assert err32 < 1e-1, f"kernel vs f32 reference: max abs err = {err32}"

    print("KERNEL_OK")
</pallas_src>

<mosaic_0001>
module attributes {stable_mosaic.version = 11 : i64} {
  func.func @_roll_probe_kernel(%arg0: memref<8x128xf32, #tpu.memory_space<vmem>>, %arg1: memref<8x128xf32, #tpu.memory_space<vmem>>) attributes {dimension_semantics = [], scalar_prefetch = 0 : i64, scratch_operands = 0 : i64, tpu.core_type = #tpu.core_type<tc>} {
    %c0 = arith.constant 0 : index
    %c0_0 = arith.constant 0 : index
    %0 = vector.load %arg0[%c0, %c0_0] : memref<8x128xf32, #tpu.memory_space<vmem>>, vector<8x128xf32>
    %c1_i32 = arith.constant 1 : i32
    %1 = tpu.dynamic_rotate %0 by %c1_i32 dim 1 : vector<8x128xf32>, i32 -> vector<8x128xf32>
    %c0_1 = arith.constant 0 : index
    %c0_2 = arith.constant 0 : index
    %2 = vector.load %arg1[%c0_1, %c0_2] : memref<8x128xf32, #tpu.memory_space<vmem>>, vector<8x128xf32>
    tpu.vector_store %arg1[%c0_1, %c0_2], %1 {strides = array<i32>} : memref<8x128xf32, #tpu.memory_space<vmem>>, vector<8x128xf32>,
    return
  }
}

module attributes {stable_mosaic.version = 11 : i64} {
  func.func @kernel(%arg0: i32, %arg1: memref<16x512xf32, #tpu.memory_space<vmem>>, %arg2: memref<4x512xbf16, #tpu.memory_space<vmem>>, %arg3: memref<4x16xbf16, #tpu.memory_space<vmem>>, %arg4: memref<4x1xf32, #tpu.memory_space<vmem>>, %arg5: memref<4x1xf32, #tpu.memory_space<vmem>>, %arg6: memref<4x144xbf16, #tpu.memory_space<vmem>>, %arg7: memref<4x1xf32, #tpu.memory_space<vmem>>, %arg8: memref<4x1xf32, #tpu.memory_space<vmem>>, %arg9: memref<16x4xbf16, #tpu.memory_space<vmem>>, %arg10: memref<16x1xf32, #tpu.memory_space<vmem>>, %arg11: memref<16x1xf32, #tpu.memory_space<vmem>>, %arg12: memref<16x512xf32, #tpu.memory_space<vmem>>, %arg13: memref<144x512xbf16, #tpu.memory_space<vmem>>) attributes {dimension_semantics = [#tpu.dimension_semantics<arbitrary>], iteration_bounds = array<i64: 1>, scalar_prefetch = 0 : i64, scratch_operands = 1 : i64, tpu.core_type = #tpu.core_type<tc>, window_params = [{pipeline_mode = #tpu.pipeline_mode<synchronous>, transform_indices = @transform_0, window_bounds = array<i64: 16, 512>}, {pipeline_mode = #tpu.pipeline_mode<synchronous>, transform_indices = @transform_1, window_bounds = array<i64: 4, 512>}, {pipeline_mode = #tpu.pipeline_mode<synchronous>, transform_indices = @transform_2, window_bounds = array<i64: 4, 16>}, {pipeline_mode = #tpu.pipeline_mode<synchronous>, transform_indices = @transform_3, window_bounds = array<i64: 4, 1>}, {pipeline_mode = #tpu.pipeline_mode<synchronous>, transform_indices = @transform_4, window_bounds = array<i64: 4, 1>}, {pipeline_mode = #tpu.pipeline_mode<synchronous>, transform_indices = @transform_5, window_bounds = array<i64: 4, 144>}, {pipeline_mode = #tpu.pipeline_mode<synchronous>, transform_indices = @transform_6, window_bounds = array<i64: 4, 1>}, {pipeline_mode = #tpu.pipeline_mode<synchronous>, transform_indices = @transform_7, window_bounds = array<i64: 4, 1>}, {pipeline_mode = #tpu.pipeline_mode<synchronous>, transform_indices = @transform_8, window_bounds = array<i64: 16, 4>}, {pipeline_mode = #tpu.pipeline_mode<synchronous>, transform_indices = @transform_9, window_bounds = array<i64: 16, 1>}, {pipeline_mode = #tpu.pipeline_mode<synchronous>, transform_indices = @transform_10, window_bounds = array<i64: 16, 1>}, {pipeline_mode = #tpu.pipeline_mode<synchronous>, transform_indices = @transform_11, window_bounds = array<i64: 16, 512>}]} {
    %c0 = arith.constant 0 : index
    %c0_0 = arith.constant 0 : index
    %0 = vector.load %arg1[%c0, %c0_0] : memref<16x512xf32, #tpu.memory_space<vmem>>, vector<16x512xf32>
    %c0_1 = arith.constant 0 : index
    %c0_2 = arith.constant 0 : index
    %1 = vector.load %arg2[%c0_1, %c0_2] : memref<4x512xbf16, #tpu.memory_space<vmem>>, vector<4x512xbf16>
    %2 = arith.extf %1 : vector<4x512xbf16> to vector<4x512xf32>
    %c0_3 = arith.constant 0 : index
    %c0_4 = arith.constant 0 : index
    %3 = vector.load %arg3[%c0_3, %c0_4] : memref<4x16xbf16, #tpu.memory_space<vmem>>, vector<4x16xbf16>
    %4 = arith.truncf %0 : vector<16x512xf32> to vector<16x512xbf16>
    %cst = arith.constant dense<0.000000e+00> : vector<4x512xf32>
    %5 = tpu.matmul %3, %4, %cst {dimension_numbers = #tpu.dot_dimension_numbers<[1], [0], [0], [1], [0, 0, 1, 1], [], []>} : vector<4x16xbf16>, vector<16x512xbf16>, vector<4x512xf32> -> vector<4x512xf32>
    %c0_5 = arith.constant 0 : index
    %c0_6 = arith.constant 0 : index
    %6 = vector.load %arg4[%c0_5, %c0_6] : memref<4x1xf32, #tpu.memory_space<vmem>>, vector<4x1xf32>
    %c0_7 = arith.constant 0 : index
    %c0_8 = arith.constant 0 : index
    %7 = vector.load %arg5[%c0_7, %c0_8] : memref<4x1xf32, #tpu.memory_space<vmem>>, vector<4x1xf32>
    %cst_9 = arith.constant dense<0.000000e+00> : vector<4xf32>
    %8 = vector.multi_reduction <add>, %5, %cst_9 [1] : vector<4x512xf32> to vector<4xf32>
    %9 = vector.shape_cast %8 : vector<4xf32> to vector<4x1xf32>
    %cst_10 = arith.constant 0.001953125 : f32
    %10 = vector.broadcast %cst_10 : f32 to vector<4x1xf32>
    %11 = arith.mulf %9, %10 : vector<4x1xf32>
    %12 = arith.mulf %5, %5 : vector<4x512xf32>
    %cst_11 = arith.constant dense<0.000000e+00> : vector<4xf32>
    %13 = vector.multi_reduction <add>, %12, %cst_11 [1] : vector<4x512xf32> to vector<4xf32>
    %14 = vector.shape_cast %13 : vector<4xf32> to vector<4x1xf32>
    %cst_12 = arith.constant 0.001953125 : f32
    %15 = vector.broadcast %cst_12 : f32 to vector<4x1xf32>
    %16 = arith.mulf %14, %15 : vector<4x1xf32>
    %17 = arith.mulf %11, %11 : vector<4x1xf32>
    %18 = arith.subf %16, %17 : vector<4x1xf32>
    %cst_13 = arith.constant 9.99999974E-6 : f32
    %19 = vector.broadcast %cst_13 : f32 to vector<4x1xf32>
    %20 = arith.addf %18, %19 : vector<4x1xf32>
    %21 = math.rsqrt %20 : vector<4x1xf32>
    %22 = arith.mulf %6, %21 : vector<4x1xf32>
    %23 = arith.mulf %11, %22 : vector<4x1xf32>
    %24 = arith.subf %7, %23 : vector<4x1xf32>
    %25 = vector.broadcast %22 : vector<4x1xf32> to vector<4x512xf32>
    %26 = arith.mulf %5, %25 : vector<4x512xf32>
    %27 = vector.broadcast %24 : vector<4x1xf32> to vector<4x512xf32>
    %28 = arith.addf %26, %27 : vector<4x512xf32>
    %cst_14 = arith.constant 0.000000e+00 : f32
    %29 = vector.broadcast %cst_14 : f32 to vector<4x512xf32>
    %30 = arith.maximumf %28, %29 : vector<4x512xf32>
    %cst_15 = arith.constant 0.000000e+00 : bf16
    %31 = vector.broadcast %cst_15 : bf16 to vector<12x512xbf16>
    %cst_16 = arith.constant 0.000000e+00 : f32
    %32 = vector.broadcast %cst_16 : f32 to vector<4x64xf32>
    %33 = tpu.concatenate %32, %30, %32 in 1 : vector<4x64xf32>, vector<4x512xf32>, vector<4x64xf32> -> vector<4x640xf32>
    %34 = vector.extract_strided_slice %33 {offsets = [0, 47], sizes = [4, 512], strides = [1, 1]} : vector<4x640xf32> to vector<4x512xf32>
    %35 = vector.extract_strided_slice %2 {offsets = [0, 0], sizes = [1, 512], strides = [1, 1]} : vector<4x512xf32> to vector<1x512xf32>
    %36 = vector.broadcast %35 : vector<1x512xf32> to vector<4x512xf32>
    %37 = arith.mulf %34, %36 : vector<4x512xf32>
    %38 = vector.extract_strided_slice %2 {offsets = [2, 0], sizes = [1, 512], strides = [1, 1]} : vector<4x512xf32> to vector<1x512xf32>
    %39 = vector.broadcast %38 : vector<1x512xf32> to vector<4x512xf32>
    %40 = arith.mulf %37, %39 : vector<4x512xf32>
    %41 = arith.truncf %40 : vector<4x512xf32> to vector<4x512xbf16>
    %42 = tpu.concatenate %41, %31 in 0 : vector<4x512xbf16>, vector<12x512xbf16> -> vector<16x512xbf16>
    %c0_17 = arith.constant 0 : index
    %c0_18 = arith.constant 0 : index
    %43 = vector.load %arg13[%c0_17, %c0_18] : memref<144x512xbf16, #tpu.memory_space<vmem>>, vector<16x512xbf16>
    tpu.vector_store %arg13[%c0_17, %c0_18], %42 {strides = array<i32>} : memref<144x512xbf16, #tpu.memory_space<vmem>>, vector<16x512xbf16>,
    %cst_19 = arith.constant 0.000000e+00 : f32
    %44 = vector.broadcast %cst_19 : f32 to vector<4x64xf32>
    %45 = tpu.concatenate %44, %30, %44 in 1 : vector<4x64xf32>, vector<4x512xf32>, vector<4x64xf32> -> vector<4x640xf32>
    %46 = vector.extract_strided_slice %45 {offsets = [0, 48], sizes = [4, 512], strides = [1, 1]} : vector<4x640xf32> to vector<4x512xf32>
    %47 = vector.extract_strided_slice %2 {offsets = [0, 0], sizes = [1, 512], strides = [1, 1]} : vector<4x512xf32> to vector<1x512xf32>
    %48 = vector.broadcast %47 : vector<1x512xf32> to vector<4x512xf32>
    %49 = arith.mulf %46, %48 : vector<4x512xf32>
    %50 = arith.truncf %49 : vector<4x512xf32> to vector<4x512xbf16>
    %51 = tpu.concatenate %50, %31 in 0 : vector<4x512xbf16>, vector<12x512xbf16> -> vector<16x512xbf16>
    %c16 = arith.constant 16 : index
    %c0_20 = arith.constant 0 : index
    %52 = vector.load %arg13[%c16, %c0_20] : memref<144x512xbf16, #tpu.memory_space<vmem>>, vector<16x512xbf16>
    tpu.vector_store %arg13[%c16, %c0_20], %51 {strides = array<i32>} : memref<144x512xbf16, #tpu.memory_space<vmem>>, vector<16x512xbf16>,
    %cst_21 = arith.constant 0.000000e+00 : f32
    %53 = vector.broadcast %cst_21 : f32 to vector<4x64xf32>
    %54 = tpu.concatenate %53, %30, %53 in 1 : vector<4x64xf32>, vector<4x512xf32>, vector<4x64xf32> -> vector<4x640xf32>
    %55 = vector.extract_strided_slice %54 {offsets = [0, 49], sizes = [4, 512], strides = [1, 1]} : vector<4x640xf32> to vector<4x512xf32>
    %56 = vector.extract_strided_slice %2 {offsets = [0, 0], sizes = [1, 512], strides = [1, 1]} : vector<4x512xf32> to vector<1x512xf32>
    %57 = vector.broadcast %56 : vector<1x512xf32> to vector<4x512xf32>
    %58 = arith.mulf %55, %57 : vector<4x512xf32>
    %59 = vector.extract_strided_slice %2 {offsets = [3, 0], sizes = [1, 512], strides = [1, 1]} : vector<4x512xf32> to vector<1x512xf32>
    %60 = vector.broadcast %59 : vector<1x512xf32> to vector<4x512xf32>
    %61 = arith.mulf %58, %60 : vector<4x512xf32>
    %62 = arith.truncf %61 : vector<4x512xf32> to vector<4x512xbf16>
    %63 = tpu.concatenate %62, %31 in 0 : vector<4x512xbf16>, vector<12x512xbf16> -> vector<16x512xbf16>
    %c32 = arith.constant 32 : index
    %c0_22 = arith.constant 0 : index
    %64 = vector.load %arg13[%c32, %c0_22] : memref<144x512xbf16, #tpu.memory_space<vmem>>, vector<16x512xbf16>
    tpu.vector_store %arg13[%c32, %c0_22], %63 {strides = array<i32>} : memref<144x512xbf16, #tpu.memory_space<vmem>>, vector<16x512xbf16>,
    %cst_23 = arith.constant 0.000000e+00 : f32
    %65 = vector.broadcast %cst_23 : f32 to vector<4x64xf32>
    %66 = tpu.concatenate %65, %30, %65 in 1 : vector<4x64xf32>, vector<4x512xf32>, vector<4x64xf32> -> vector<4x640xf32>
    %67 = vector.extract_strided_slice %66 {offsets = [0, 63], sizes = [4, 512], strides = [1, 1]} : vector<4x640xf32> to vector<4x512xf32>
    %68 = vector.extract_strided_slice %2 {offsets = [2, 0], sizes = [1, 512], strides = [1, 1]} : vector<4x512xf32> to vector<1x512xf32>
    %69 = vector.broadcast %68 : vector<1x512xf32> to vector<4x512xf32>
    %70 = arith.mulf %67, %69 : vector<4x512xf32>
    %71 = arith.truncf %70 : vector<4x512xf32> to vector<4x512xbf16>
    %72 = tpu.concatenate %71, %31 in 0 : vector<4x512xbf16>, vector<12x512xbf16> -> vector<16x512xbf16>
    %c48 = arith.constant 48 : index
    %c0_24 = arith.constant 0 : index
    %73 = vector.load %arg13[%c48, %c0_24] : memref<144x512xbf16, #tpu.memory_space<vmem>>, vector<16x512xbf16>
    tpu.vector_store %arg13[%c48, %c0_24], %72 {strides = array<i32>} : memref<144x512xbf16, #tpu.memory_space<vmem>>, vector<16x512xbf16>,
    %74 = arith.truncf %30 : vector<4x512xf32> to vector<4x512xbf16>
    %75 = tpu.concatenate %74, %31 in 0 : vector<4x512xbf16>, vector<12x512xbf16> -> vector<16x512xbf16>
    %c64 = arith.constant 64 : index
    %c0_25 = arith.constant 0 : index
    %76 = vector.load %arg13[%c64, %c0_25] : memref<144x512xbf16, #tpu.memory_space<vmem>>, vector<16x512xbf16>
    tpu.vector_store %arg13[%c64, %c0_25], %75 {strides = array<i32>} : memref<144x512xbf16, #tpu.memory_space<vmem>>, vector<16x512xbf16>,
    %cst_26 = arith.constant 0.000000e+00 : f32
    %77 = vector.broadcast %cst_26 : f32 to vector<4x64xf32>
    %78 = tpu.concatenate %77, %30, %77 in 1 : vector<4x64xf32>, vector<4x512xf32>, vector<4x64xf32> -> vector<4x640xf32>
    %79 = vector.extract_strided_slice %78 {offsets = [0, 65], sizes = [4, 512], strides = [1, 1]} : vector<4x640xf32> to vector<4x512xf32>
    %80 = vector.extract_strided_slice %2 {offsets = [3, 0], sizes = [1, 512], strides = [1, 1]} : vector<4x512xf32> to vector<1x512xf32>
    %81 = vector.broadcast %80 : vector<1x512xf32> to vector<4x512xf32>
    %82 = arith.mulf %79, %81 : vector<4x512xf32>
    %83 = arith.truncf %82 : vector<4x512xf32> to vector<4x512xbf16>
    %84 = tpu.concatenate %83, %31 in 0 : vector<4x512xbf16>, vector<12x512xbf16> -> vector<16x512xbf16>
    %c80 = arith.constant 80 : index
    %c0_27 = arith.constant 0 : index
    %85 = vector.load %arg13[%c80, %c0_27] : memref<144x512xbf16, #tpu.memory_space<vmem>>, vector<16x512xbf16>
    tpu.vector_store %arg13[%c80, %c0_27], %84 {strides = array<i32>} : memref<144x512xbf16, #tpu.memory_space<vmem>>, vector<16x512xbf16>,
    %cst_28 = arith.constant 0.000000e+00 : f32
    %86 = vector.broadcast %cst_28 : f32 to vector<4x64xf32>
    %87 = tpu.concatenate %86, %30, %86 in 1 : vector<4x64xf32>, vector<4x512xf32>, vector<4x64xf32> -> vector<4x640xf32>
    %88 = vector.extract_strided_slice %87 {offsets = [0, 79], sizes = [4, 512], strides = [1, 1]} : vector<4x640xf32> to vector<4x512xf32>
    %89 = vector.extract_strided_slice %2 {offsets = [1, 0], sizes = [1, 512], strides = [1, 1]} : vector<4x512xf32> to vector<1x512xf32>
    %90 = vector.broadcast %89 : vector<1x512xf32> to vector<4x512xf32>
    %91 = arith.mulf %88, %90 : vector<4x512xf32>
    %92 = vector.extract_strided_slice %2 {offsets = [2, 0], sizes = [1, 512], strides = [1, 1]} : vector<4x512xf32> to vector<1x512xf32>
    %93 = vector.broadcast %92 : vector<1x512xf32> to vector<4x512xf32>
    %94 = arith.mulf %91, %93 : vector<4x512xf32>
    %95 = arith.truncf %94 : vector<4x512xf32> to vector<4x512xbf16>
    %96 = tpu.concatenate %95, %31 in 0 : vector<4x512xbf16>, vector<12x512xbf16> -> vector<16x512xbf16>
    %c96 = arith.constant 96 : index
    %c0_29 = arith.constant 0 : index
    %97 = vector.load %arg13[%c96, %c0_29] : memref<144x512xbf16, #tpu.memory_space<vmem>>, vector<16x512xbf16>
    tpu.vector_store %arg13[%c96, %c0_29], %96 {strides = array<i32>} : memref<144x512xbf16, #tpu.memory_space<vmem>>, vector<16x512xbf16>,
    %cst_30 = arith.constant 0.000000e+00 : f32
    %98 = vector.broadcast %cst_30 : f32 to vector<4x64xf32>
    %99 = tpu.concatenate %98, %30, %98 in 1 : vector<4x64xf32>, vector<4x512xf32>, vector<4x64xf32> -> vector<4x640xf32>
    %100 = vector.extract_strided_slice %99 {offsets = [0, 80], sizes = [4, 512], strides = [1, 1]} : vector<4x640xf32> to vector<4x512xf32>
    %101 = vector.extract_strided_slice %2 {offsets = [1, 0], sizes = [1, 512], strides = [1, 1]} : vector<4x512xf32> to vector<1x512xf32>
    %102 = vector.broadcast %101 : vector<1x512xf32> to vector<4x512xf32>
    %103 = arith.mulf %100, %102 : vector<4x512xf32>
    %104 = arith.truncf %103 : vector<4x512xf32> to vector<4x512xbf16>
    %105 = tpu.concatenate %104, %31 in 0 : vector<4x512xbf16>, vector<12x512xbf16> -> vector<16x512xbf16>
    %c112 = arith.constant 112 : index
    %c0_31 = arith.constant 0 : index
    %106 = vector.load %arg13[%c112, %c0_31] : memref<144x512xbf16, #tpu.memory_space<vmem>>, vector<16x512xbf16>
    tpu.vector_store %arg13[%c112, %c0_31], %105 {strides = array<i32>} : memref<144x512xbf16, #tpu.memory_space<vmem>>, vector<16x512xbf16>,
    %cst_32 = arith.constant 0.000000e+00 : f32
    %107 = vector.broadcast %cst_32 : f32 to vector<4x64xf32>
    %108 = tpu.concatenate %107, %30, %107 in 1 : vector<4x64xf32>, vector<4x512xf32>, vector<4x64xf32> -> vector<4x640xf32>
    %109 = vector.extract_strided_slice %108 {offsets = [0, 81], sizes = [4, 512], strides = [1, 1]} : vector<4x640xf32> to vector<4x512xf32>
    %110 = vector.extract_strided_slice %2 {offsets = [1, 0], sizes = [1, 512], strides = [1, 1]} : vector<4x512xf32> to vector<1x512xf32>
    %111 = vector.broadcast %110 : vector<1x512xf32> to vector<4x512xf32>
    %112 = arith.mulf %109, %111 : vector<4x512xf32>
    %113 = vector.extract_strided_slice %2 {offsets = [3, 0], sizes = [1, 512], strides = [1, 1]} : vector<4x512xf32> to vector<1x512xf32>
    %114 = vector.broadcast %113 : vector<1x512xf32> to vector<4x512xf32>
    %115 = arith.mulf %112, %114 : vector<4x512xf32>
    %116 = arith.truncf %115 : vector<4x512xf32> to vector<4x512xbf16>
    %117 = tpu.concatenate %116, %31 in 0 : vector<4x512xbf16>, vector<12x512xbf16> -> vector<16x512xbf16>
    %c128 = arith.constant 128 : index
    %c0_33 = arith.constant 0 : index
    %118 = vector.load %arg13[%c128, %c0_33] : memref<144x512xbf16, #tpu.memory_space<vmem>>, vector<16x512xbf16>
    tpu.vector_store %arg13[%c128, %c0_33], %117 {strides = array<i32>} : memref<144x512xbf16, #tpu.memory_space<vmem>>, vector<16x512xbf16>,
    %c0_34 = arith.constant 0 : index
    %c0_35 = arith.constant 0 : index
    %119 = vector.load %arg6[%c0_34, %c0_35] : memref<4x144xbf16, #tpu.memory_space<vmem>>, vector<4x144xbf16>
    %c0_36 = arith.constant 0 : index
    %c0_37 = arith.constant 0 : index
    %120 = vector.load %arg13[%c0_36, %c0_37] : memref<144x512xbf16, #tpu.memory_space<vmem>>, vector<144x512xbf16>
    %cst_38 = arith.constant dense<0.000000e+00> : vector<4x512xf32>
    %121 = tpu.matmul %119, %120, %cst_38 {dimension_numbers = #tpu.dot_dimension_numbers<[1], [0], [0], [1], [0, 0, 1, 1], [], []>} : vector<4x144xbf16>, vector<144x512xbf16>, vector<4x512xf32> -> vector<4x512xf32>
    %c0_39 = arith.constant 0 : index
    %c0_40 = arith.constant 0 : index
    %122 = vector.load %arg7[%c0_39, %c0_40] : memref<4x1xf32, #tpu.memory_space<vmem>>, vector<4x1xf32>
    %c0_41 = arith.constant 0 : index
    %c0_42 = arith.constant 0 : index
    %123 = vector.load %arg8[%c0_41, %c0_42] : memref<4x1xf32, #tpu.memory_space<vmem>>, vector<4x1xf32>
    %cst_43 = arith.constant dense<0.000000e+00> : vector<4xf32>
    %124 = vector.multi_reduction <add>, %121, %cst_43 [1] : vector<4x512xf32> to vector<4xf32>
    %125 = vector.shape_cast %124 : vector<4xf32> to vector<4x1xf32>
    %cst_44 = arith.constant 0.001953125 : f32
    %126 = vector.broadcast %cst_44 : f32 to vector<4x1xf32>
    %127 = arith.mulf %125, %126 : vector<4x1xf32>
    %128 = arith.mulf %121, %121 : vector<4x512xf32>
    %cst_45 = arith.constant dense<0.000000e+00> : vector<4xf32>
    %129 = vector.multi_reduction <add>, %128, %cst_45 [1] : vector<4x512xf32> to vector<4xf32>
    %130 = vector.shape_cast %129 : vector<4xf32> to vector<4x1xf32>
    %cst_46 = arith.constant 0.001953125 : f32
    %131 = vector.broadcast %cst_46 : f32 to vector<4x1xf32>
    %132 = arith.mulf %130, %131 : vector<4x1xf32>
    %133 = arith.mulf %127, %127 : vector<4x1xf32>
    %134 = arith.subf %132, %133 : vector<4x1xf32>
    %cst_47 = arith.constant 9.99999974E-6 : f32
    %135 = vector.broadcast %cst_47 : f32 to vector<4x1xf32>
    %136 = arith.addf %134, %135 : vector<4x1xf32>
    %137 = math.rsqrt %136 : vector<4x1xf32>
    %138 = arith.mulf %122, %137 : vector<4x1xf32>
    %139 = arith.mulf %127, %138 : vector<4x1xf32>
    %140 = arith.subf %123, %139 : vector<4x1xf32>
    %141 = vector.broadcast %138 : vector<4x1xf32> to vector<4x512xf32>
    %142 = arith.mulf %121, %141 : vector<4x512xf32>
    %143 = vector.broadcast %140 : vector<4x1xf32> to vector<4x512xf32>
    %144 = arith.addf %142, %143 : vector<4x512xf32>
    %cst_48 = arith.constant 0.000000e+00 : f32
    %145 = vector.broadcast %cst_48 : f32 to vector<4x512xf32>
    %146 = arith.maximumf %144, %145 : vector<4x512xf32>
    %c0_49 = arith.constant 0 : index
    %c0_50 = arith.constant 0 : index
    %147 = vector.load %arg9[%c0_49, %c0_50] : memref<16x4xbf16, #tpu.memory_space<vmem>>, vector<16x4xbf16>
    %148 = arith.truncf %146 : vector<4x512xf32> to vector<4x512xbf16>
    %cst_51 = arith.constant dense<0.000000e+00> : vector<16x512xf32>
    %149 = tpu.matmul %147, %148, %cst_51 {dimension_numbers = #tpu.dot_dimension_numbers<[1], [0], [0], [1], [0, 0, 1, 1], [], []>} : vector<16x4xbf16>, vector<4x512xbf16>, vector<16x512xf32> -> vector<16x512xf32>
    %c0_52 = arith.constant 0 : index
    %c0_53 = arith.constant 0 : index
    %150 = vector.load %arg10[%c0_52, %c0_53] : memref<16x1xf32, #tpu.memory_space<vmem>>, vector<16x1xf32>
    %c0_54 = arith.constant 0 : index
    %c0_55 = arith.constant 0 : index
    %151 = vector.load %arg11[%c0_54, %c0_55] : memref<16x1xf32, #tpu.memory_space<vmem>>, vector<16x1xf32>
    %cst_56 = arith.constant dense<0.000000e+00> : vector<16xf32>
    %152 = vector.multi_reduction <add>, %149, %cst_56 [1] : vector<16x512xf32> to vector<16xf32>
    %153 = vector.shape_cast %152 : vector<16xf32> to vector<16x1xf32>
    %cst_57 = arith.constant 0.001953125 : f32
    %154 = vector.broadcast %cst_57 : f32 to vector<16x1xf32>
    %155 = arith.mulf %153, %154 : vector<16x1xf32>
    %156 = arith.mulf %149, %149 : vector<16x512xf32>
    %cst_58 = arith.constant dense<0.000000e+00> : vector<16xf32>
    %157 = vector.multi_reduction <add>, %156, %cst_58 [1] : vector<16x512xf32> to vector<16xf32>
    %158 = vector.shape_cast %157 : vector<16xf32> to vector<16x1xf32>
    %cst_59 = arith.constant 0.001953125 : f32
    %159 = vector.broadcast %cst_59 : f32 to vector<16x1xf32>
    %160 = arith.mulf %158, %159 : vector<16x1xf32>
    %161 = arith.mulf %155, %155 : vector<16x1xf32>
    %162 = arith.subf %160, %161 : vector<16x1xf32>
    %cst_60 = arith.constant 9.99999974E-6 : f32
    %163 = vector.broadcast %cst_60 : f32 to vector<16x1xf32>
    %164 = arith.addf %162, %163 : vector<16x1xf32>
    %165 = math.rsqrt %164 : vector<16x1xf32>
    %166 = arith.mulf %150, %165 : vector<16x1xf32>
    %167 = arith.mulf %155, %166 : vector<16x1xf32>
    %168 = arith.subf %151, %167 : vector<16x1xf32>
    %169 = vector.broadcast %166 : vector<16x1xf32> to vector<16x512xf32>
    %170 = arith.mulf %149, %169 : vector<16x512xf32>
    %171 = vector.broadcast %168 : vector<16x1xf32> to vector<16x512xf32>
    %172 = arith.addf %170, %171 : vector<16x512xf32>
    %173 = arith.addf %172, %0 : vector<16x512xf32>
    %cst_61 = arith.constant 0.000000e+00 : f32
    %174 = vector.broadcast %cst_61 : f32 to vector<16x512xf32>
    %175 = arith.maximumf %173, %174 : vector<16x512xf32>
    %c0_62 = arith.constant 0 : index
    %c0_63 = arith.constant 0 : index
    %176 = vector.load %arg12[%c0_62, %c0_63] : memref<16x512xf32, #tpu.memory_space<vmem>>, vector<16x512xf32>
    tpu.vector_store %arg12[%c0_62, %c0_63], %175 {strides = array<i32>} : memref<16x512xf32, #tpu.memory_space<vmem>>, vector<16x512xf32>,
    return
  }
  func.func @transform_0(%arg0: i32) -> (i32, i32) {
    %c0_i32 = arith.constant 0 : i32
    %c0_i32_0 = arith.constant 0 : i32
    %c0_i32_1 = arith.constant 0 : i32
    return %c0_i32, %c0_i32_0 : i32, i32
  }
  func.func @transform_1(%arg0: i32) -> (i32, i32) {
    %c0_i32 = arith.constant 0 : i32
    %c0_i32_0 = arith.constant 0 : i32
    %c0_i32_1 = arith.constant 0 : i32
    return %c0_i32, %c0_i32_0 : i32, i32
  }
  func.func @transform_2(%arg0: i32) -> (i32, i32) {
    %c0_i32 = arith.constant 0 : i32
    %c0_i32_0 = arith.constant 0 : i32
    %c0_i32_1 = arith.constant 0 : i32
    return %c0_i32, %c0_i32_0 : i32, i32
  }
  func.func @transform_3(%arg0: i32) -> (i32, i32) {
    %c0_i32 = arith.constant 0 : i32
    %c0_i32_0 = arith.constant 0 : i32
    %c0_i32_1 = arith.constant 0 : i32
    return %c0_i32, %c0_i32_0 : i32, i32
  }
  func.func @transform_4(%arg0: i32) -> (i32, i32) {
    %c0_i32 = arith.constant 0 : i32
    %c0_i32_0 = arith.constant 0 : i32
    %c0_i32_1 = arith.constant 0 : i32
    return %c0_i32, %c0_i32_0 : i32, i32
  }
  func.func @transform_5(%arg0: i32) -> (i32, i32) {
    %c0_i32 = arith.constant 0 : i32
    %c0_i32_0 = arith.constant 0 : i32
    %c0_i32_1 = arith.constant 0 : i32
    return %c0_i32, %c0_i32_0 : i32, i32
  }
  func.func @transform_6(%arg0: i32) -> (i32, i32) {
    %c0_i32 = arith.constant 0 : i32
    %c0_i32_0 = arith.constant 0 : i32
    %c0_i32_1 = arith.constant 0 : i32
    return %c0_i32, %c0_i32_0 : i32, i32
  }
  func.func @transform_7(%arg0: i32) -> (i32, i32) {
    %c0_i32 = arith.constant 0 : i32
    %c0_i32_0 = arith.constant 0 : i32
    %c0_i32_1 = arith.constant 0 : i32
    return %c0_i32, %c0_i32_0 : i32, i32
  }
  func.func @transform_8(%arg0: i32) -> (i32, i32) {
    %c0_i32 = arith.constant 0 : i32
    %c0_i32_0 = arith.constant 0 : i32
    %c0_i32_1 = arith.constant 0 : i32
    return %c0_i32, %c0_i32_0 : i32, i32
  }
  func.func @transform_9(%arg0: i32) -> (i32, i32) {
    %c0_i32 = arith.constant 0 : i32
    %c0_i32_0 = arith.constant 0 : i32
    %c0_i32_1 = arith.constant 0 : i32
    return %c0_i32, %c0_i32_0 : i32, i32
  }
  func.func @transform_10(%arg0: i32) -> (i32, i32) {
    %c0_i32 = arith.constant 0 : i32
    %c0_i32_0 = arith.constant 0 : i32
    %c0_i32_1 = arith.constant 0 : i32
    return %c0_i32, %c0_i32_0 : i32, i32
  }
  func.func @transform_11(%arg0: i32) -> (i32, i32) {
    %c0_i32 = arith.constant 0 : i32
    %c0_i32_0 = arith.constant 0 : i32
    %c0_i32_1 = arith.constant 0 : i32
    return %c0_i32, %c0_i32_0 : i32, i32
  }
}

</mosaic_0001>

<bundles_post_ra>
// kernel: tpu_custom_call.1
= control target key start
LH: loop header
LB: loop body
LE: loop exit
PB: predicated region body
PF: predicated region fallthrough
CT: control target
= control target key end

     0   :  { %6 = vsyncpa [#allocation3], 0  ;;  %s118_s0 = inlined_call_operand.hbm [shape: f32[8,128], index: 0, kind: input, shape index: {}]   ;;  %s119_s1 = inlined_call_operand.hbm [shape: f32[8,128], index: 1, kind: output, shape index: {}]  }
   0x1   :  { %7 = vsyncpa [#allocation4], 0  ;;  %s13_s8 = sshll.u32 %s118_s0, 4  ;;  %s99_s9 = smov [#allocation2]   ;;  %s14_s8 = int_to_ptr.hbm [resolvable:$true] %s13_s8 }
   0x2   :  { %s15_s10 = sshll.u32 %s99_s9, 4  ;;  %s16_s10 = int_to_ptr.vmem [resolvable:$true] %s15_s10 }
   0x3   :  { %18 = dma.hbm_to_vmem [thread:$0]  %s14_s8, 128, %s16_s10, [#allocation3]  }
   0x4   :  { %95 = dma.done.wait [#allocation3], 128  }
   0x5   :  { %96 = vsyncadd [#allocation3], 4294967168  ;;  %v23_v0 = vld [vmem:[#allocation2] sm:$0xff]  ;;  %s100_s11 = smov 1   ;;  %s101_s12 = smov [#allocation5]  }
   0x6   :  { %24 = vrot.lane.b32.xlu0 %v23_v0, %s100_s11  ;;  %s32_s13 = sshll.u32 %s101_s12, 4  ;;  %s34_s16 = sshll.u32 %s119_s1, 4  ;;  %s33_s13 = int_to_ptr.vmem [resolvable:$true] %s32_s13  ;;  %s35_s16 = int_to_ptr.hbm [resolvable:$true] %s34_s16 }
  0x78   :  { %v25_v1 = vpop.permute.xlu0 %24 }
  0x79   :  { %26 = vst [vmem:[#allocation5] sm:$0xff] %v25_v1 }
  0x7a   :  { %37 = dma.vmem_to_hbm [thread:$0]  %s33_s13, 128, %s35_s16, [#allocation4]  }
  0x7b   :  { %97 = dma.done.wait [#allocation4], 128  }
  0x7c   :  { %98 = vsyncadd [#allocation4], 4294967168 }
  0x7d   :  { %42 = vsyncpa [#allocation3], 1 }
  0x7e   :  { %43 = vsyncpa [#allocation4], 1 }

// kernel: tpu_custom_call.1
= control target key start
LH: loop header
LB: loop body
LE: loop exit
PB: predicated region body
PF: predicated region fallthrough
CT: control target
= control target key end

     0   :  { %16 = vsyncpa [#allocation4], 0  ;;  %s3298_s0 = inlined_call_operand.hbm [shape: f32[16,512], index: 0, kind: input, shape index: {}]   ;;  %s3299_s1 = inlined_call_operand.vmem [shape: bf16[4,512], index: 1, kind: input, shape index: {}]   ;;  %s3300_s2 = inlined_call_operand.vmem [shape: bf16[4,16], index: 2, kind: input, shape index: {}]   ;;  %s3301_s3 = inlined_call_operand.vmem [shape: f32[4,1], index: 3, kind: input, shape index: {}]   ;;  %s3302_s4 = inlined_call_operand.vmem [shape: f32[4,1], index: 4, kind: input, shape index: {}]   ;;  %s3303_s5 = inlined_call_operand.vmem [shape: bf16[4,144], index: 5, kind: input, shape index: {}]   ;;  %s3304_s6 = inlined_call_operand.vmem [shape: f32[4,1], index: 6, kind: input, shape index: {}]   ;;  %s3305_s7 = inlined_call_operand.vmem [shape: f32[4,1], index: 7, kind: input, shape index: {}]   ;;  %s3306_s8 = inlined_call_operand.vmem [shape: bf16[16,4], index: 8, kind: input, shape index: {}]   ;;  %s3307_s9 = inlined_call_operand.vmem [shape: f32[16,1], index: 9, kind: input, shape index: {}]   ;;  %s3308_s10 = inlined_call_operand.vmem [shape: f32[16,1], index: 10, kind: input, shape index: {}]   ;;  %s3309_s11 = inlined_call_operand.hbm [shape: f32[16,512], index: 11, kind: output, shape index: {}]  }
   0x1   :  { %17 = vsyncpa [#allocation5], 0  ;;  %s22_s19 = sshll.u32 %s3298_s0, 4  ;;  %s2269_s20 = smov [#allocation3]   ;;  %s23_s19 = int_to_ptr.hbm [resolvable:$true] %s22_s19 }
   0x2   :  { %s24_s21 = sshll.u32 %s2269_s20, 4  ;;  %s2270_s22 = smov 512   ;;  %s25_s21 = int_to_ptr.vmem [resolvable:$true] %s24_s21 }
   0x3   :  { %s2271_s23 = smov 32  }
   0x4   :  { %30 = dma.hbm_to_vmem [thread:$0]  %s23_s19, 1024, %s25_s21, [#allocation4], %s2270_s22, %s2270_s22, %s2271_s23  }
   0x5   :  { %2265 = dma.done.wait [#allocation4], 1024  }
   0x6   :  { %2266 = vsyncadd [#allocation4], 4294966272  ;;  %v56_v0 = vld [vmem:[#allocation3] sm:$0xff]  ;;  %v57_v2 = vld [vmem:[#allocation3 + $0x8] sm:$0xff]  ;;  %vm72_vm0 = vcmask 130048   ;;  %vm130_vm1 = vcmask 1043456  }
   0x7   :  { %v60_v1 = vld [vmem:[#allocation3 + $0x20] sm:$0xff]  ;;  %v61_v4 = vld [vmem:[#allocation3 + $0x28] sm:$0xff]  ;;  %v58_v5 = vld [vmem:[#allocation3 + $0x10] sm:$0xff]  ;;  %s2274_s27 = smov 65   ;;  %s2275_s28 = smov 63   ;;  %vm466_vm2 = vcmask 654336  }
   0x8   :  { %v68_v3 = vpack.c.bf16 %v60_v1, %v56_v0  ;;  %v62_v6 = vld [vmem:[#allocation3 + $0x30] sm:$0xff]  ;;  %v69_v7 = vpack.c.bf16 %v61_v4, %v57_v2  ;;  %v59_v9 = vld [vmem:[#allocation3 + $0x18] sm:$0xff]  ;;  %s2276_s29 = smov 49   ;;  %s2277_s30 = smov 48   ;;  %vm607_vm3 = vcmask 646144   ;;  %vm711_vm7 = vcmask 531456  }
   0x9   :  { %v70_v8 = vpack.c.bf16 %v62_v6, %v58_v5  ;;  %v63_v10 = vld [vmem:[#allocation3 + $0x38] sm:$0xff]  ;;  %s2278_s12 = smov 47   ;;  %s2280_s13 = smov 81   ;;  %vm490_vm8 = vcmask 400384   ;;  %vm309_vm9 = vcmask 1041408   ;;  %vm362_vm10 = vcmask 662528  }
   0xa   :  { %83 = vmatpush.bf16.msra.mxu0 %v68_v3  ;;  %v71_v11 = vpack.c.bf16 %v63_v10, %v59_v9  ;;  %v67_v12 = vld [vmem:[%s3300_s2] sm:$0x3]  ;;  %96 = vmatpush.bf16.msra.mxu1 %v69_v7  ;;  %s2273_s2 = smov 80   ;;  %vm242_vm11 = vcmask 384000   ;;  %vm205_vm12 = vcmask 523264   ;;  %vm631_vm13 = vcmask 515072  }
   0xb   :  { %v64_v13 = vld [vmem:[%s3299_s1] sm:$0xff]  ;;  %109 = vmatpush.bf16.msra.mxu2 %v70_v8  ;;  %s2272_s1 = smov 79   ;;  %vm386_vm14 = vcmask 392192  }
   0xc   :  { %v2355_v14 = vunpack.c.h.bf16 %v64_v13  ;;  %v2357_v15 = vunpack.c.l.bf16 %v64_v13  ;;  %122 = vmatpush.bf16.msra.mxu3 %v71_v11 }
   0xd   :  { %1867 = vmatmul.msk.bf16.vlgmr.msra.gmra.mxu0 %vm72_vm0, %v67_v12  ;;  %1868 = vmatmul.msk.bf16.vlgmr.msra.gmra.mxu1 %vm72_vm0, %v67_v12 }
   0xe   :  { %v258_v16 = vperm.slane %v2355_v14, 2  ;;  %v259_v17 = vperm.slane %v2355_v14, 6  ;;  %v875_v18 = vperm.slane %v2357_v15, 1  ;;  %v876_v19 = vperm.slane %v2357_v15, 5  ;;  %1869 = vmatmul.msk.bf16.vlgmr.msra.gmra.mxu2 %vm72_vm0, %v67_v12 }
   0xf   :  { %1870 = vmatmul.msk.bf16.vlgmr.msra.gmra.mxu3 %vm72_vm0, %v67_v12  ;;  %v256_v26 = vperm.slane %v2357_v15, 2  ;;  %v257_v27 = vperm.slane %v2357_v15, 6  ;;  %v877_v31 = vperm.slane %v2355_v14, 1  ;;  %v878_v32 = vperm.slane %v2355_v14, 5 }
  0x10   :  { %v266_v20 = vperm.slane %v258_v16, 2  ;;  %v267_v21 = vperm.slane %v259_v17, 2  ;;  %v883_v22 = vperm.slane %v875_v18, 1  ;;  %v884_v23 = vperm.slane %v876_v19, 1 }
  0x11   :  { %v264_v28 = vperm.slane %v256_v26, 2  ;;  %v265_v29 = vperm.slane %v257_v27, 2  ;;  %v885_v33 = vperm.slane %v877_v31, 1  ;;  %v886_v34 = vperm.slane %v878_v32, 1 }
  0x12   :  { %v2367_v24 = vpack.i.bf16 %v267_v21, %v266_v20  ;;  %v2369_v25 = vpack.i.bf16 %v884_v23, %v883_v22  ;;  %v504_v36 = vperm.slane %v2357_v15, 3  ;;  %v505_v37 = vperm.slane %v2357_v15, 7 }
  0x13   :  { %v2379_v30 = vpack.i.bf16 %v265_v29, %v264_v28  ;;  %v2385_v35 = vpack.i.bf16 %v886_v34, %v885_v33  ;;  %v220_v3 = vperm.slane %v2355_v14, 0  ;;  %v221_v4 = vperm.slane %v2355_v14, 4 }
  0x14   :  { %2104 = vrot.lane.b32.xlu0 %v2367_v24, %s2272_s1  ;;  %2079 = vrot.lane.b32.xlu2 %v2369_v25, %s2273_s2  ;;  %v512_v42 = vperm.slane %v504_v36, 3  ;;  %v513_v43 = vperm.slane %v505_v37, 3  ;;  %v506_v8 = vperm.slane %v2355_v14, 3  ;;  %v507_v9 = vperm.slane %v2355_v14, 7 }
  0x15   :  { %2084 = vrot.lane.b32.xlu1 %v2385_v35, %s2273_s2  ;;  %v228_v5 = vperm.slane %v220_v3, 0  ;;  %v229_v6 = vperm.slane %v221_v4, 0  ;;  %v218_v10 = vperm.slane %v2357_v15, 0  ;;  %v219_v11 = vperm.slane %v2357_v15, 4 }
  0x16   :  { %v2407_v48 = vpack.i.bf16 %v513_v43, %v512_v42  ;;  %v514_v12 = vperm.slane %v506_v8, 3  ;;  %v515_v13 = vperm.slane %v507_v9, 3  ;;  %v2279_v15 = vmov 0  }
  0x17   :  { %v2133_v7 = vpack.i.bf16 %v229_v6, %v228_v5  ;;  %v226_v16 = vperm.slane %v218_v10, 0  ;;  %v227_v17 = vperm.slane %v219_v11, 0  ;;  %2183 = vset.pattern.permute.xlu1 %v2279_v15  ;;  %2199 = vset.pattern.permute.xlu0 %v2279_v15 }
  0x18   :  { %v2438_v18 = vpack.i.bf16 %v515_v13, %v514_v12  ;;  %2200 = vset.pattern.permute.xlu2 %v2279_v15 }
  0x19   :  { %v2148_v19 = vpack.i.bf16 %v227_v17, %v226_v16 }
  0x1c   :  { %2089 = vrot.lane.b32.xlu2 %v2369_v25, %s2272_s1 }
  0x1d   :  { %2094 = vrot.lane.b32.xlu1 %v2385_v35, %s2272_s1 }
  0x24   :  { %2099 = vrot.lane.b32.xlu2 %v2379_v30, %s2272_s1 }
  0x25   :  { %2109 = vrot.lane.b32.xlu1 %v2407_v48, %s2274_s27 }
  0x2c   :  { %2114 = vrot.lane.b32.xlu2 %v2438_v18, %s2274_s27 }
  0x2d   :  { %2124 = vrot.lane.b32.xlu1 %v2367_v24, %s2275_s28 }
  0x34   :  { %2129 = vrot.lane.b32.xlu2 %v2148_v19, %s2276_s29 }
  0x35   :  { %2139 = vrot.lane.b32.xlu1 %v2407_v48, %s2276_s29 }
  0x3c   :  { %2144 = vrot.lane.b32.xlu2 %v2438_v18, %s2276_s29 }
  0x3d   :  { %2154 = vrot.lane.b32.xlu1 %v2133_v7, %s2277_s30 }
  0x44   :  { %2159 = vrot.lane.b32.xlu2 %v2369_v25, %s2280_s13 }
  0x45   :  { %2169 = vrot.lane.b32.xlu1 %v2148_v19, %s2278_s12 }
  0x4c   :  { %2174 = vrot.lane.b32.xlu2 %v2133_v7, %s2278_s12 }
  0x54   :  { %2190 = vrot.lane.b32.xlu2 %v2379_v30, %s2278_s12 }
  0x6e   :  { %v2450_v22 = vpop.permute.xlu2 %2079 }
  0x6f   :  { %v2082_v28 = vunpack.i.h.bf16 %v2450_v22 }
  0x76   :  { %v2465_v36 = vpop.permute.xlu2 %2089 }
  0x77   :  { %v2092_v37 = vunpack.i.h.bf16 %v2465_v36 }
  0x86   :  { %v2444_v14 = vpop.permute.xlu0 %2104 }
  0x87   :  { %v2453_v31 = vpop.permute.xlu1 %2084 }
  0x88   :  { %v2086_v32 = vunpack.i.l.bf16 %v2453_v31 }
  0x8a   :  { %v2391_v38 = vpop.f32.mrf.mxu0  ;;  %v2393_v39 = vpop.f32.mrf.mxu1  ;;  %v2463_v34 = vsel %vm466_vm2, %v2082_v28, %v2086_v32 }
  0x8b   :  { %v131_v40 = vsel %vm130_vm1, %v2391_v38, 0.0  ;;  %v132_v41 = vsel %vm130_vm1, %v2393_v39, 0.0  ;;  %v141_v44 = vmul.f32 %v2391_v38, %v2391_v38  ;;  %v142_v45 = vmul.f32 %v2393_v39, %v2393_v39 }
  0x8c   :  { %v133_v46 = vadd.f32 %v132_v41, %v131_v40 }
  0x8d   :  { %v145_v49 = vsel %vm130_vm1, %v141_v44, 0.0  ;;  %v146_v50 = vsel %vm130_vm1, %v142_v45, 0.0 }
  0x8e   :  { %v147_v59 = vadd.f32 %v146_v50, %v145_v49  ;;  %v128_v49 = vld [vmem:[%s3301_s3] sm:$0xf]  ;;  %s2281_s3 = smov 64  }
  0x8f   :  { %v2468_v40 = vpop.permute.xlu1 %2094 }
  0x90   :  { %v3322_v25 = vunpack.i.l.bf16 %v2468_v40 }
  0x91   :  { %v2405_v47 = vpop.f32.mrf.mxu2 }
  0x92   :  { %v134_v51 = vsel %vm130_vm1, %v2405_v47, 0.0  ;;  %v143_v52 = vmul.f32 %v2405_v47, %v2405_v47  ;;  %v2415_v53 = vpop.f32.mrf.mxu3  ;;  %v87_v54 = vpop.f32.mrf.mxu0  ;;  %v2477_v43 = vsel %vm607_vm3, %v2092_v37, %v3322_v25 }
  0x93   :  { %v100_v55 = vpop.f32.mrf.mxu1  ;;  %v135_v56 = vadd.f32 %v134_v51, %v133_v46  ;;  %v136_v57 = vsel %vm130_vm1, %v2415_v53, 0.0  ;;  %v144_v60 = vmul.f32 %v2415_v53, %v2415_v53 }
  0x94   :  { %v148_v61 = vsel %vm130_vm1, %v143_v52, 0.0  ;;  %v129_v55 = vld [vmem:[%s3302_s4] sm:$0xf] }
  0x95   :  { %v137_v58 = vadd.f32 %v136_v57, %v135_v56  ;;  %v149_v63 = vadd.f32 %v148_v61, %v147_v59  ;;  %v150_v1 = vsel %vm130_vm1, %v144_v60, 0.0  ;;  %v2489_v57 = vpop.permute.xlu2 %2099 }
  0x97   :  { %138 = vadd.xlane.f32.xlu0 %v137_v58  ;;  %v151_v2 = vadd.f32 %v150_v1, %v149_v63  ;;  %v2491_v58 = vpop.permute.xlu1 %2109 }
  0x98   :  { %v2112_v59 = vunpack.i.h.bf16 %v2491_v58 }
  0x99   :  { %v113_v62 = vpop.f32.mrf.mxu2 }
  0x9a   :  { %v126_v0 = vpop.f32.mrf.mxu3 }
  0x9d   :  { %v2496_v60 = vpop.permute.xlu2 %2114 }
  0x9e   :  { %v2116_v61 = vunpack.i.l.bf16 %v2496_v60 }
  0x9f   :  { %152 = vadd.xlane.f32.xlu0 %v151_v2 }
  0xb3   :  { %2119 = vrot.lane.b32.xlu0 %v2379_v30, %s2275_s28 }
  0xbb   :  { %2134 = vrot.lane.b32.xlu0 %v2133_v7, %s2276_s29 }
  0xc3   :  { %2149 = vrot.lane.b32.xlu0 %v2148_v19, %s2277_s30 }
  0xcb   :  { %2164 = vrot.lane.b32.xlu0 %v2385_v35, %s2280_s13  ;;  %v2504_v35 = vsel %vm711_vm7, %v2112_v59, %v2116_v61 }
  0xd3   :  { %2179 = vrot.lane.b32.xlu0 %v2407_v48, %s2280_s13  ;;  %v2508_v48 = vpop.permute.xlu1 %2124 }
  0xdb   :  { %2195 = vrot.lane.b32.xlu0 %v2367_v24, %s2278_s12  ;;  %v2510_v24 = vpop.permute.xlu2 %2129  ;;  %v2515_v0 = vpop.permute.xlu1 %2139 }
  0xdc   :  { %v2132_v63 = vunpack.i.h.bf16 %v2510_v24  ;;  %v2142_v2 = vunpack.i.h.bf16 %v2515_v0 }
  0xe3   :  { %v2517_v1 = vpop.permute.xlu2 %2144  ;;  %v2540_v8 = vpop.permute.xlu1 %2154 }
  0xe4   :  { %v3321_v3 = vunpack.i.l.bf16 %v2517_v1  ;;  %3329 = vst [vmem:[#allocation9_spill] sm:$0xff] %v2540_v8 }
  0xe6   :  { %v2529_v6 = vsel %vm490_vm8, %v2142_v2, %v3321_v3 }
  0xeb   :  { %v2542_v9 = vpop.permute.xlu1 %2169 }
 0x10a   :  { %v139_v20 = vpop.xlane.xlu0 %138 }
 0x10b   :  { %v140_v21 = vmul.f32 0.001953125, %v139_v20 }
 0x10d   :  { %v155_v26 = vmul.f32 %v140_v21, %v140_v21 }
 0x112   :  { %v153_v23 = vpop.xlane.xlu0 %152 }
 0x113   :  { %v154_v27 = vmul.f32 0.001953125, %v153_v23 }
 0x115   :  { %v156_v29 = vsub.f32 %v154_v27, %v155_v26 }
 0x117   :  { %v157_v33 = vadd.f32 1e-05, %v156_v29 }
 0x119   :  { %2201 = vrsqrt.f32 %v157_v33  ;;  %vm164_vm5 = vweird.f32 %v157_v33 }
 0x11f   :  { %v2202_v41 = vpop.eup %2201 }
 0x120   :  { %v159_v42 = vmul.f32 %v2202_v41, %v157_v33  ;;  %vm165_vm4 = vweird.f32 %v2202_v41 }
 0x121   :  { %vm166_vm6 = vmor %vm164_vm5, %vm165_vm4 }
 0x122   :  { %v160_v44 = vmul.f32 %v2202_v41, %v159_v42 }
 0x124   :  { %v161_v45 = vmul.f32 0.5, %v160_v44 }
 0x125   :  { %v2512_v62 = vpop.permute.xlu0 %2119 }
 0x126   :  { %v162_v46 = vsub.f32 1.5, %v161_v45 }
 0x128   :  { %v163_v50 = vmul.f32 %v2202_v41, %v162_v46 }
 0x12a   :  { %v167_v51 = vsel %vm166_vm6, %v2202_v41, %v163_v50 }
 0x12b   :  { %v168_v52 = vmul.f32 %v167_v51, %v128_v49 }
 0x12d   :  { %173 = vperm.xlu1 %2183, %v168_v52   ;;  %v169_v54 = vmul.f32 %v168_v52, %v140_v21  ;;  %v2521_v4 = vpop.permute.xlu0 %2134 }
 0x12e   :  { %v3320_v5 = vunpack.i.l.bf16 %v2521_v4 }
 0x12f   :  { %v170_v56 = vsub.f32 %v129_v55, %v169_v54 }
 0x130   :  { %v2536_v7 = vsel %vm490_vm8, %v2132_v63, %v3320_v5 }
 0x135   :  { %182 = vperm.xlu1 %2183, %v170_v56  }
 0x13d   :  { %2185 = vrot.lane.b32.xlu1 %v2438_v18, %s2280_s13 }
 0x19f   :  { %v174_v10 = vpop.permute.xlu1 %173 }
 0x1a0   :  { %v176_v11 = vmul.f32 %v174_v10, %v2391_v38  ;;  %v177_v12 = vmul.f32 %v174_v10, %v2393_v39  ;;  %v178_v13 = vmul.f32 %v174_v10, %v2405_v47  ;;  %v179_v16 = vmul.f32 %v174_v10, %v2415_v53  ;;  %v2548_v53 = vpop.permute.xlu0 %2149 }
 0x1a7   :  { %v183_v17 = vpop.permute.xlu1 %182 }
 0x1a8   :  { %v188_v18 = vadd.f32 %v183_v17, %v179_v16  ;;  %v187_v19 = vadd.f32 %v183_v17, %v178_v13  ;;  %v185_v15 = vadd.f32 %v183_v17, %v176_v11  ;;  %v186_v20 = vadd.f32 %v183_v17, %v177_v12 }
 0x1aa   :  { %v192_v21 = vmax.f32 %v188_v18, 0.0  ;;  %v191_v30 = vmax.f32 %v187_v19, 0.0  ;;  %v189_v23 = vmax.f32 %v185_v15, 0.0  ;;  %v190_v26 = vmax.f32 %v186_v20, 0.0  ;;  %v2554_v18 = vpop.permute.xlu2 %2159 }
 0x1ab   :  { %v3318_v20 = vunpack.i.h.bf16 %v2554_v18 }
 0x1ac   :  { %203 = vrot.lane.b32.xlu1 %v192_v21, %s2281_s3  ;;  %201 = vrot.lane.b32.xlu0 %v191_v30, %s2281_s3  ;;  %v728_v27 = vpack.c.bf16 %v192_v21, %v191_v30  ;;  %v727_v38 = vpack.c.bf16 %v190_v26, %v189_v23  ;;  %v2557_v21 = vpop.permute.xlu0 %2164 }
 0x1ad   :  { %197 = vrot.lane.b32.xlu2 %v189_v23, %s2281_s3  ;;  %v3315_v30 = vunpack.i.l.bf16 %v2557_v21 }
 0x1ae   :  { %v733_v39 = vunpack.c.l.b16 %v728_v27  ;;  %v734_v29 = vunpack.c.h.b16 %v728_v27  ;;  %v731_v47 = vunpack.c.l.b16 %v727_v38  ;;  %v732_v33 = vunpack.c.h.b16 %v727_v38 }
 0x1af   :  { %v2565_v23 = vsel %vm362_vm10, %v3318_v20, %v3315_v30  ;;  %v2151_v20 = vunpack.i.l.bf16 %v2548_v53 }
 0x1b0   :  { %v737_v41 = vpack.c.b16 %v733_v39, %v733_v39  ;;  %v738_v42 = vpack.c.b16 %v734_v29, %v734_v29  ;;  %v735_v44 = vpack.c.b16 %v731_v47, %v731_v47  ;;  %v736_v45 = vpack.c.b16 %v732_v33, %v732_v33 }
 0x1b2   :  { %v744_v46 = vsel %vm309_vm9, %v737_v41, 0  ;;  %v746_v49 = vsel %vm309_vm9, %v738_v42, 0  ;;  %v740_v50 = vsel %vm309_vm9, %v735_v44, 0  ;;  %v742_v51 = vsel %vm309_vm9, %v736_v45, 0  ;;  %v2585_v42 = vpop.permute.xlu1 %2185 }
 0x1b3   :  { %v753_v52 = vunpack.c.l.b16 %v744_v46  ;;  %v754_v54 = vunpack.c.l.b16 %v746_v49  ;;  %v757_v55 = vunpack.c.h.b16 %v744_v46  ;;  %v758_v56 = vunpack.c.h.b16 %v746_v49 }
 0x1b4   :  { %v751_v10 = vunpack.c.l.b16 %v740_v50  ;;  %v752_v11 = vunpack.c.l.b16 %v742_v51  ;;  %v755_v12 = vunpack.c.h.b16 %v740_v50  ;;  %v756_v13 = vunpack.c.h.b16 %v742_v51  ;;  %v2569_v27 = vpop.permute.xlu0 %2179 }
 0x1b5   :  { %v760_v16 = vpack.c.b16 %v754_v54, %v753_v52  ;;  %v762_v17 = vpack.c.b16 %v758_v56, %v757_v55  ;;  %199 = vrot.lane.b32.xlu2 %v190_v26, %s2281_s3  ;;  %v2567_v26 = vpop.permute.xlu2 %2174  ;;  %v3312_v41 = vunpack.i.h.bf16 %v2569_v27  ;;  %v3314_v44 = vunpack.i.l.bf16 %v2585_v42 }
 0x1b6   :  { %v759_v19 = vpack.c.b16 %v752_v11, %v751_v10  ;;  %v761_v15 = vpack.c.b16 %v756_v13, %v755_v12  ;;  %v2131_v49 = vunpack.i.l.bf16 %v2510_v24  ;;  %v2141_v51 = vunpack.i.l.bf16 %v2515_v0 }
 0x1b7   :  { %768 = vst [vmem:[#allocation2 + $0x88] sm:$0xff] %v760_v16  ;;  %v2593_v45 = vsel %vm362_vm10, %v3312_v41, %v3314_v44  ;;  %v2081_v54 = vunpack.i.l.bf16 %v2450_v22  ;;  %v2111_v55 = vunpack.i.l.bf16 %v2491_v58  ;;  %v3311_v58 = vunpack.i.h.bf16 %v2444_v14 }
 0x1b8   :  { %770 = vst [vmem:[#allocation2 + $0x98] sm:$0xff] %v762_v17  ;;  %v491_v13 = vsel %vm490_vm8, %v2131_v49, %v2132_v63  ;;  %v528_v63 = vsel %vm490_vm8, %v2141_v51, %v2142_v2  ;;  %v2087_v2 = vunpack.i.h.bf16 %v2453_v31 }
 0x1b9   :  { %767 = vst [vmem:[#allocation2 + $0x80] sm:$0xff] %v759_v19  ;;  %v1025_v11 = vsel %vm466_vm2, %v2081_v54, %v2082_v28  ;;  %v780_v12 = vsel %vm711_vm7, %v2111_v55, %v2112_v59  ;;  %v2106_v59 = vunpack.i.l.bf16 %v2444_v14 }
 0x1ba   :  { %769 = vst [vmem:[#allocation2 + $0x90] sm:$0xff] %v761_v15 }
 0x1bb   :  { %v2639_v0 = vsel %vm607_vm3, %v2106_v59, %v3311_v58 }
 0x1bc   :  { %v2574_v29 = vpop.permute.xlu0 %2195 }
 0x1bd   :  { %v2571_v38 = vpop.permute.xlu2 %2190  ;;  %v3310_v47 = vunpack.i.l.bf16 %v2574_v29 }
 0x1be   :  { %v3313_v39 = vunpack.i.h.bf16 %v2571_v38 }
 0x1c0   :  { %v2582_v33 = vsel %vm242_vm11, %v3313_v39, %v3310_v47  ;;  %v3316_v47 = vunpack.i.l.bf16 %v2465_v36 }
 0x207   :  { %v198_v46 = vpop.permute.xlu2 %197 }
 0x208   :  { %v2597_v50 = vsel %vm205_vm12, 0.0, %v198_v46 }
 0x209   :  { %v499_v52 = vmul.f32 %v2131_v49, %v2597_v50  ;;  %v1033_v17 = vmul.f32 %v2081_v54, %v2597_v50  ;;  %v788_v22 = vmul.f32 %v2111_v55, %v2597_v50  ;;  %v2121_v49 = vunpack.i.l.bf16 %v2512_v62 }
 0x20b   :  { %v2603_v56 = vmul.f32 %v2141_v51, %v499_v52  ;;  %v2122_v51 = vunpack.i.h.bf16 %v2512_v62 }
 0x20f   :  { %v2605_v10 = vpop.permute.xlu2 %199 }
 0x210   :  { %v2618_v16 = vsel %vm205_vm12, %v198_v46, %v2605_v10 }
 0x211   :  { %v1034_v19 = vmul.f32 %v1025_v11, %v2618_v16  ;;  %v789_v28 = vmul.f32 %v780_v12, %v2618_v16  ;;  %v500_v24 = vmul.f32 %v491_v13, %v2618_v16 }
 0x213   :  { %v1038_v15 = vpack.c.bf16 %v1034_v19, %v1033_v17  ;;  %v793_v46 = vpack.c.bf16 %v789_v28, %v788_v22  ;;  %v2631_v52 = vmul.f32 %v528_v63, %v500_v24  ;;  %v3317_v22 = vunpack.i.h.bf16 %v2496_v60 }
 0x214   :  { %v3319_v28 = vunpack.i.h.bf16 %v2508_v48  ;;  %v632_v24 = vsel %vm631_vm13, %v2121_v49, %v2122_v51 }
 0x215   :  { %v1044_v54 = vunpack.c.l.b16 %v1038_v15  ;;  %v1045_v55 = vunpack.c.h.b16 %v1038_v15  ;;  %v799_v11 = vunpack.c.l.b16 %v793_v46  ;;  %v800_v12 = vunpack.c.h.b16 %v793_v46 }
 0x216   :  { %v2126_v15 = vunpack.i.l.bf16 %v2508_v48  ;;  %v641_v41 = vmul.f32 %v632_v24, %v2618_v16 }
 0x217   :  { %v1049_v13 = vpack.c.b16 %v1044_v54, %v1044_v54  ;;  %v1050_v17 = vpack.c.b16 %v1045_v55, %v1045_v55  ;;  %v804_v19 = vpack.c.b16 %v799_v11, %v799_v11  ;;  %v805_v63 = vpack.c.b16 %v800_v12, %v800_v12 }
 0x218   :  { %v2655_v11 = vsel %vm607_vm3, %v3316_v47, %v2092_v37 }
 0x219   :  { %v1055_v46 = vsel %vm309_vm9, %v1049_v13, 0  ;;  %v1057_v58 = vsel %vm309_vm9, %v1050_v17, 0  ;;  %v2659_v44 = vsel %vm309_vm9, %v804_v19, 0  ;;  %v640_v13 = vmul.f32 %v2121_v49, %v2597_v50 }
 0x21a   :  { %v1074_v62 = vunpack.c.h.b16 %v1055_v46  ;;  %v1075_v39 = vunpack.c.h.b16 %v1057_v58  ;;  %v1069_v54 = vunpack.c.l.b16 %v1055_v46  ;;  %v1070_v55 = vunpack.c.l.b16 %v1057_v58 }
 0x21b   :  { %v2664_v58 = vsel %vm309_vm9, %v805_v63, 0  ;;  %v1027_v46 = vsel %vm466_vm2, %v2086_v32, %v2087_v2  ;;  %v645_v47 = vpack.c.bf16 %v641_v41, %v640_v13  ;;  %v782_v49 = vsel %vm711_vm7, %v2116_v61, %v3317_v22 }
 0x21c   :  { %v1082_v24 = vpack.c.b16 %v1075_v39, %v1074_v62  ;;  %v1079_v30 = vpack.c.b16 %v1070_v55, %v1069_v54  ;;  %v634_v39 = vsel %vm631_vm13, %v2126_v15, %v3319_v28  ;;  %v3323_v19 = vunpack.i.h.bf16 %v2540_v8 }
 0x21d   :  { %v824_v41 = vunpack.c.l.b16 %v2659_v44  ;;  %v825_v54 = vunpack.c.l.b16 %v2664_v58  ;;  %v2156_v22 = vunpack.i.l.bf16 %v2540_v8  ;;  %v652_v3 = vunpack.c.h.b16 %v645_v47 }
 0x21e   :  { %1091 = vrot.lane.b32.xlu0 %v1082_v24, %s2277_s30  ;;  %1085 = vrot.lane.b32.xlu1 %v1079_v30, %s2277_s30  ;;  %v204_v31 = vpop.permute.xlu1 %203  ;;  %v202_v32 = vpop.permute.xlu0 %201 }
 0x21f   :  { %v2683_v63 = vsel %vm205_vm12, %v204_v31, 0.0  ;;  %v2687_v61 = vsel %vm205_vm12, %v2605_v10, %v202_v32  ;;  %v2690_v62 = vsel %vm205_vm12, %v202_v32, %v204_v31  ;;  %v2152_v10 = vunpack.i.h.bf16 %v2548_v53 }
 0x220   :  { %v1035_v55 = vmul.f32 %v2463_v34, %v2687_v61  ;;  %v1036_v30 = vmul.f32 %v1027_v46, %v2690_v62  ;;  %v790_v13 = vmul.f32 %v2504_v35, %v2687_v61  ;;  %v791_v24 = vmul.f32 %v782_v49, %v2690_v62 }
 0x221   :  { %v651_v31 = vunpack.c.l.b16 %v645_v47  ;;  %v633_v32 = vsel %vm631_vm13, %v2122_v51, %v2126_v15  ;;  %v834_v34 = vpack.c.b16 %v825_v54, %v824_v41  ;;  %v643_v25 = vmul.f32 %v634_v39, %v2690_v62 }
 0x222   :  { %v1039_v28 = vpack.c.bf16 %v1036_v30, %v1035_v55  ;;  %v794_v5 = vpack.c.bf16 %v791_v24, %v790_v13  ;;  %v642_v46 = vmul.f32 %v633_v32, %v2687_v61  ;;  %v1037_v35 = vmul.f32 %v2087_v2, %v2683_v63 }
 0x223   :  { %v389_v53 = vsel %vm386_vm14, %v2156_v22, %v3323_v19  ;;  %v388_v51 = vsel %vm386_vm14, %v2152_v10, %v2156_v22  ;;  %v387_v15 = vsel %vm386_vm14, %v2151_v20, %v2152_v10  ;;  %v656_v47 = vpack.c.b16 %v651_v31, %v651_v31 }
 0x224   :  { %v1046_v49 = vunpack.c.l.b16 %v1039_v28  ;;  %v1047_v37 = vunpack.c.h.b16 %v1039_v28  ;;  %v801_v17 = vunpack.c.l.b16 %v794_v5  ;;  %v802_v12 = vunpack.c.h.b16 %v794_v5 }
 0x225   :  { %v657_v2 = vpack.c.b16 %v652_v3, %v652_v3  ;;  %v646_v30 = vpack.c.bf16 %v643_v25, %v642_v46  ;;  %v1040_v28 = vpack.c.bf16 %v1037_v35, %v1037_v35  ;;  %v396_v5 = vmul.f32 %v387_v15, %v2618_v16 }
 0x226   :  { %840 = vrot.lane.b32.xlu0 %v834_v34, %s2275_s28  ;;  %v1051_v41 = vpack.c.b16 %v1046_v49, %v1046_v49  ;;  %v1052_v54 = vpack.c.b16 %v1047_v37, %v1047_v37  ;;  %v806_v39 = vpack.c.b16 %v801_v17, %v801_v17  ;;  %v807_v55 = vpack.c.b16 %v802_v12, %v802_v12 }
 0x227   :  { %v2718_v3 = vsel %vm309_vm9, %v656_v47, 0  ;;  %v395_v25 = vmul.f32 %v2151_v20, %v2597_v50  ;;  %v2722_v35 = vsel %vm309_vm9, %v657_v2, 0  ;;  %v653_v15 = vunpack.c.l.b16 %v646_v30 }
 0x228   :  { %v1059_v13 = vsel %vm309_vm9, %v1051_v41, 0  ;;  %v1061_v24 = vsel %vm309_vm9, %v1052_v54, 0  ;;  %v814_v22 = vsel %vm309_vm9, %v806_v39, 0  ;;  %v816_v10 = vsel %vm309_vm9, %v807_v55, 0 }
 0x229   :  { %v1076_v31 = vunpack.c.h.b16 %v1059_v13  ;;  %v1077_v32 = vunpack.c.h.b16 %v1061_v24  ;;  %v1071_v34 = vunpack.c.l.b16 %v1059_v13  ;;  %v1072_v49 = vunpack.c.l.b16 %v1061_v24 }
 0x22a   :  { %v831_v37 = vunpack.c.h.b16 %v814_v22  ;;  %v832_v17 = vunpack.c.h.b16 %v816_v10  ;;  %v654_v54 = vunpack.c.h.b16 %v646_v30  ;;  %v397_v39 = vmul.f32 %v388_v51, %v2687_v61 }
 0x22b   :  { %v1083_v12 = vpack.c.b16 %v1077_v32, %v1076_v31  ;;  %v1080_v46 = vpack.c.b16 %v1072_v49, %v1071_v34  ;;  %v398_v55 = vmul.f32 %v389_v53, %v2690_v62  ;;  %v3324_v13 = vunpack.i.h.bf16 %v2517_v1 }
 0x22c   :  { %v838_v41 = vpack.c.b16 %v832_v17, %v831_v37  ;;  %v3327_v24 = vunpack.i.h.bf16 %v2521_v4  ;;  %v1048_v20 = vunpack.c.l.b16 %v1040_v28  ;;  %v400_v47 = vpack.c.bf16 %v396_v5, %v395_v25 }
 0x22d   :  { %1093 = vrot.lane.b32.xlu1 %v1083_v12, %s2277_s30  ;;  %1087 = vrot.lane.b32.xlu2 %v1080_v46, %s2277_s30  ;;  %v829_v2 = vunpack.c.h.b16 %v2659_v44  ;;  %v830_v30 = vunpack.c.h.b16 %v2664_v58  ;;  %v681_v51 = vunpack.c.h.b16 %v2718_v3  ;;  %v682_v53 = vunpack.c.h.b16 %v2722_v35 }
 0x22e   :  { %848 = vrot.lane.b32.xlu0 %v838_v41, %s2275_s28  ;;  %v3330_v31 = vunpack.i.h.bf16 %v2489_v57  ;;  %v826_v34 = vunpack.c.l.b16 %v814_v22  ;;  %v827_v49 = vunpack.c.l.b16 %v816_v10  ;;  %v658_v28 = vpack.c.b16 %v653_v15, %v653_v15 }
 0x22f   :  { %v3332_v37 = vunpack.i.l.bf16 %v2489_v57  ;;  %v659_v58 = vpack.c.b16 %v654_v54, %v654_v54  ;;  %v401_v17 = vpack.c.bf16 %v398_v55, %v397_v39  ;;  %v910_v25 = vmul.f32 %v2477_v43, %v2687_v61 }
 0x230   :  { %v922_v32 = vsel %vm607_vm3, %v3330_v31, %v2106_v59  ;;  %v3331_v5 = vmov %v3330_v31  ;;  %v3333_v12 = vunpack.i.h.bf16 %v2468_v40  ;;  %v3334_v46 = vunpack.i.l.bf16 %v2468_v40 }
 0x231   :  { %v2745_v44 = vsel %vm607_vm3, %v3332_v37, %v3331_v5  ;;  %v3335_v22 = vunpack.i.l.bf16 %v2517_v1  ;;  %v1053_v15 = vpack.c.b16 %v1048_v20, %v1048_v20  ;;  %v406_v41 = vunpack.c.l.b16 %v400_v47 }
 0x232   :  { %v902_v59 = vsel %vm607_vm3, %v3334_v46, %v3333_v12  ;;  %v3336_v54 = vunpack.i.l.bf16 %v2521_v4  ;;  %v837_v39 = vpack.c.b16 %v830_v30, %v829_v2  ;;  %v689_v55 = vpack.c.b16 %v682_v53, %v681_v51 }
 0x233   :  { %v530_v10 = vsel %vm490_vm8, %v3335_v22, %v3324_v13  ;;  %v407_v31 = vunpack.c.h.b16 %v400_v47  ;;  %v835_v5 = vpack.c.b16 %v827_v49, %v826_v34  ;;  %v2765_v37 = vsel %vm309_vm9, %v658_v28, 0 }
 0x234   :  { %v493_v43 = vsel %vm490_vm8, %v3336_v54, %v3327_v24  ;;  %v911_v12 = vmul.f32 %v902_v59, %v2690_v62  ;;  %v931_v46 = vmul.f32 %v922_v32, %v910_v25  ;;  %v2769_v22 = vsel %vm309_vm9, %v659_v58, 0 }
 0x235   :  { %v408_v20 = vunpack.c.l.b16 %v401_v17  ;;  %v409_v19 = vunpack.c.h.b16 %v401_v17  ;;  %v3337_v13 = vunpack.i.h.bf16 %v2508_v48  ;;  %v2161_v2 = vunpack.i.l.bf16 %v2554_v18  ;;  %846 = vrot.lane.b32.xlu2 %v837_v39, %s2275_s28  ;;  %842 = vrot.lane.b32.xlu1 %v835_v5, %s2275_s28 }
 0x236   :  { %v2778_v47 = vsel %vm309_vm9, %v1053_v15, 0  ;;  %v411_v30 = vpack.c.b16 %v406_v41, %v406_v41  ;;  %v932_v51 = vmul.f32 %v2639_v0, %v911_v12  ;;  %698 = vrot.lane.b32.xlu0 %v689_v55, %s2274_s27  ;;  %v676_v53 = vunpack.c.l.b16 %v2718_v3 }
 0x237   :  { %v644_v8 = vmul.f32 %v3337_v13, %v2683_v63  ;;  %v412_v32 = vpack.c.b16 %v407_v31, %v407_v31  ;;  %v501_v48 = vmul.f32 %v2536_v7, %v2687_v61  ;;  %v502_v13 = vmul.f32 %v493_v43, %v2690_v62 }
 0x238   :  { %v678_v34 = vunpack.c.l.b16 %v2765_v37  ;;  %v679_v49 = vunpack.c.l.b16 %v2769_v22  ;;  %v677_v28 = vunpack.c.l.b16 %v2722_v35  ;;  %v2789_v58 = vpack.c.bf16 %v932_v51, %v931_v46 }
 0x239   :  { %v1073_v0 = vunpack.c.l.b16 %v2778_v47  ;;  %v413_v17 = vpack.c.b16 %v408_v20, %v408_v20  ;;  %v414_v25 = vpack.c.b16 %v409_v19, %v409_v19  ;;  %v647_v59 = vpack.c.bf16 %v644_v8, %v644_v8 }
 0x23a   :  { %v3338_v3 = vunpack.i.h.bf16 %v2554_v18  ;;  %v2172_v15 = vunpack.i.h.bf16 %v2542_v9  ;;  %v538_v41 = vmul.f32 %v2529_v6, %v501_v48  ;;  %v539_v54 = vmul.f32 %v530_v10, %v502_v13 }
 0x23b   :  { %v2171_v35 = vunpack.i.l.bf16 %v2542_v9  ;;  %v3326_v43 = vunpack.i.h.bf16 %v2557_v21  ;;  %v2804_v39 = vsel %vm309_vm9, %v411_v30, 0  ;;  %v3339_v8 = vunpack.i.h.bf16 %v2496_v60 }
 0x23c   :  { %v2797_v7 = vsel %vm362_vm10, %v2161_v2, %v3338_v3  ;;  %v687_v55 = vpack.c.b16 %v679_v49, %v678_v34  ;;  %v686_v31 = vpack.c.b16 %v677_v28, %v676_v53  ;;  %v2810_v5 = vsel %vm309_vm9, %v412_v32, 0 }
 0x23d   :  { %v792_v19 = vmul.f32 %v3339_v8, %v2683_v63  ;;  %v2812_v12 = vpack.c.bf16 %v539_v54, %v538_v41  ;;  %v1081_v6 = vpack.c.b16 %v1073_v0, %v1073_v0  ;;  %v421_v10 = vsel %vm309_vm9, %v413_v17, 0 }
 0x23e   :  { %v423_v46 = vsel %vm309_vm9, %v414_v25, 0  ;;  %v655_v20 = vunpack.c.l.b16 %v647_v59  ;;  %v2177_v30 = vunpack.i.h.bf16 %v2567_v26  ;;  %v2176_v51 = vunpack.i.l.bf16 %v2567_v26  ;;  %694 = vrot.lane.b32.xlu2 %v687_v55, %s2274_s27  ;;  %692 = vrot.lane.b32.xlu1 %v686_v31, %s2274_s27 }
 0x23f   :  { %v3328_v60 = vunpack.i.h.bf16 %v2585_v42  ;;  %v3340_v53 = vunpack.i.l.bf16 %v2465_v36  ;;  %1089 = vrot.lane.b32.xlu0 %v1081_v6, %s2277_s30  ;;  %v431_v48 = vunpack.c.l.b16 %v2804_v39  ;;  %v432_v13 = vunpack.c.l.b16 %v2810_v5 }
 0x240   :  { %v795_v34 = vpack.c.bf16 %v792_v19, %v792_v19  ;;  %v909_v49 = vmul.f32 %v2655_v11, %v2618_v16  ;;  %v433_v28 = vunpack.c.l.b16 %v421_v10  ;;  %v434_v0 = vunpack.c.l.b16 %v423_v46 }
 0x241   :  { %v908_v32 = vmul.f32 %v3340_v53, %v2597_v50  ;;  %v683_v17 = vunpack.c.h.b16 %v2765_v37  ;;  %v684_v25 = vunpack.c.h.b16 %v2769_v22  ;;  %v243_v36 = vsel %vm242_vm11, %v2171_v35, %v2172_v15 }
 0x242   :  { %v3341_v59 = vunpack.i.l.bf16 %v2557_v21  ;;  %v2192_v41 = vunpack.i.l.bf16 %v2571_v38  ;;  %v660_v54 = vpack.c.b16 %v655_v20, %v655_v20  ;;  %v2198_v11 = vunpack.i.h.bf16 %v2574_v29 }
 0x243   :  { %v3342_v37 = vunpack.i.l.bf16 %v2585_v42  ;;  %v2848_v8 = vpack.c.bf16 %v2631_v52, %v2603_v56  ;;  %v1139_v19 = vmul.f32 %v2565_v23, %v2687_v61  ;;  %v803_v55 = vunpack.c.l.b16 %v795_v34 }
 0x244   :  { %v1131_v3 = vsel %vm362_vm10, %v3341_v59, %v3326_v43  ;;  %v3343_v31 = vunpack.i.l.bf16 %v2489_v57  ;;  %v930_v20 = vmul.f32 %v2745_v44, %v909_v49  ;;  %v441_v59 = vpack.c.b16 %v432_v13, %v431_v48 }
 0x245   :  { %v1152_v22 = vsel %vm362_vm10, %v3342_v37, %v3328_v60  ;;  %v1140_v53 = vmul.f32 %v1131_v3, %v2690_v62  ;;  %v442_v43 = vpack.c.b16 %v434_v0, %v433_v28  ;;  %v690_v24 = vpack.c.b16 %v684_v25, %v683_v17 }
 0x246   :  { %v929_v6 = vmul.f32 %v3343_v31, %v908_v32  ;;  %v1078_v37 = vunpack.c.h.b16 %v2778_v47  ;;  %v2858_v60 = vsel %vm309_vm9, %v660_v54, 0  ;;  %v942_v56 = vunpack.c.l.b16 %v2789_v58  ;;  %447 = vrot.lane.b32.xlu2 %v441_v59, %s2273_s2 }
 0x247   :  { %v1160_v23 = vmul.f32 %v2593_v45, %v1139_v19  ;;  %v1161_v52 = vmul.f32 %v1152_v22, %v1140_v53  ;;  %v2181_v57 = vunpack.i.l.bf16 %v2569_v27  ;;  %700 = vrot.lane.b32.xlu1 %v690_v24, %s2274_s27  ;;  %v438_v44 = vunpack.c.h.b16 %v421_v10  ;;  %449 = vrot.lane.b32.xlu0 %v442_v43, %s2273_s2 }
 0x248   :  { %v439_v32 = vunpack.c.h.b16 %v423_v46  ;;  %v943_v48 = vunpack.c.h.b16 %v2789_v58  ;;  %v244_v47 = vsel %vm242_vm11, %v2172_v15, %v2176_v51  ;;  %v808_v13 = vpack.c.b16 %v803_v55, %v803_v55 }
 0x249   :  { %v934_v34 = vpack.c.bf16 %v930_v20, %v929_v6  ;;  %v2868_v49 = vpack.c.bf16 %v1161_v52, %v1160_v23  ;;  %v245_v45 = vsel %vm242_vm11, %v2176_v51, %v2177_v30  ;;  %v3344_v28 = vunpack.i.h.bf16 %v2571_v38 }
 0x24a   :  { %v3345_v10 = vunpack.i.h.bf16 %v2569_v27  ;;  %v680_v15 = vunpack.c.l.b16 %v2858_v60  ;;  %v3346_v43 = vunpack.i.l.bf16 %v2574_v29  ;;  %v1084_v0 = vpack.c.b16 %v1078_v37, %v1078_v37 }
 0x24b   :  { %v280_v24 = vsel %vm242_vm11, %v2192_v41, %v3344_v28  ;;  %v947_v17 = vpack.c.b16 %v942_v56, %v942_v56  ;;  %v3347_v51 = vunpack.i.h.bf16 %v2468_v40  ;;  %v445_v25 = vpack.c.b16 %v439_v32, %v438_v44 }
 0x24c   :  { %v1150_v58 = vsel %vm362_vm10, %v2181_v57, %v3345_v10  ;;  %v282_v46 = vsel %vm242_vm11, %v3346_v43, %v2198_v11  ;;  %v948_v3 = vpack.c.b16 %v943_v48, %v943_v48  ;;  %v251_v27 = vmul.f32 %v2171_v35, %v2597_v50 }
 0x24d   :  { %v912_v38 = vmul.f32 %v3347_v51, %v2683_v63  ;;  %v252_v54 = vmul.f32 %v243_v36, %v2618_v16  ;;  %v818_v22 = vsel %vm309_vm9, %v808_v13, 0  ;;  %v436_v19 = vunpack.c.h.b16 %v2804_v39 }
 0x24e   :  { %v940_v55 = vunpack.c.l.b16 %v934_v34  ;;  %v941_v31 = vunpack.c.h.b16 %v934_v34  ;;  %v688_v6 = vpack.c.b16 %v680_v15, %v680_v15  ;;  %v288_v20 = vmul.f32 %v2192_v41, %v251_v27  ;;  %455 = vrot.lane.b32.xlu2 %v445_v25, %s2273_s2 }
 0x24f   :  { %v289_v53 = vmul.f32 %v280_v24, %v252_v54  ;;  %v1137_v40 = vmul.f32 %v2161_v2, %v2597_v50  ;;  %v2898_v59 = vsel %vm309_vm9, %v947_v17, 0  ;;  %v3348_v9 = vunpack.i.h.bf16 %v2444_v14  ;;  %1095 = vrot.lane.b32.xlu1 %v1084_v0, %s2277_s30  ;;  %s1854_s30 = sshll.u32 %s3309_s11, 4  ;;  %s1855_s30 = int_to_ptr.hbm [resolvable:$true] %s1854_s30 }
 0x250   :  { %v1138_v36 = vmul.f32 %v2797_v7, %v2618_v16  ;;  %v253_v39 = vmul.f32 %v244_v47, %v2687_v61  ;;  %v2908_v41 = vsel %vm309_vm9, %v948_v3, 0  ;;  %v549_v18 = vunpack.c.l.b16 %v2812_v12  ;;  %696 = vrot.lane.b32.xlu0 %v688_v6, %s2274_s27 }
 0x251   :  { %v933_v35 = vmul.f32 %v3348_v9, %v912_v38  ;;  %v550_v50 = vunpack.c.h.b16 %v2812_v12  ;;  %v2912_v2 = vpack.c.bf16 %v289_v53, %v288_v20  ;;  %v1158_v14 = vmul.f32 %v2181_v57, %v1137_v40 }
 0x252   :  { %v1159_v37 = vmul.f32 %v1150_v58, %v1138_v36  ;;  %v254_v16 = vmul.f32 %v245_v45, %v2690_v62  ;;  %v290_v61 = vmul.f32 %v2582_v33, %v253_v39  ;;  %v833_v7 = vunpack.c.h.b16 %v818_v22 }
 0x253   :  { %v437_v56 = vunpack.c.h.b16 %v2810_v5  ;;  %v945_v23 = vpack.c.b16 %v940_v55, %v940_v55  ;;  %v946_v52 = vpack.c.b16 %v941_v31, %v941_v31  ;;  %v967_v44 = vunpack.c.l.b16 %v2898_v59 }
 0x254   :  { %v968_v32 = vunpack.c.l.b16 %v2908_v41  ;;  %v2920_v12 = vpack.c.bf16 %v1159_v37, %v1158_v14  ;;  %v291_v48 = vmul.f32 %v282_v46, %v254_v16  ;;  %v554_v47 = vpack.c.b16 %v549_v18, %v549_v18 }
 0x255   :  { %v555_v13 = vpack.c.b16 %v550_v50, %v550_v50  ;;  %v936_v57 = vpack.c.bf16 %v933_v35, %v933_v35  ;;  %v839_v62 = vpack.c.b16 %v833_v7, %v833_v7  ;;  %v444_v45 = vpack.c.b16 %v437_v56, %v436_v19 }
 0x256   :  { %v2922_v34 = vpack.c.bf16 %v291_v48, %v290_v61  ;;  %v3349_v33 = vunpack.i.h.bf16 %v2521_v4  ;;  %v976_v28 = vpack.c.b16 %v968_v32, %v967_v44  ;;  %v951_v24 = vsel %vm309_vm9, %v945_v23, 0 }
 0x257   :  { %v953_v10 = vsel %vm309_vm9, %v946_v52, 0  ;;  %850 = vrot.lane.b32.xlu2 %v839_v62, %s2275_s28  ;;  %453 = vrot.lane.b32.xlu1 %v444_v45, %s2273_s2  ;;  %v2932_v58 = vsel %vm309_vm9, %v554_v47, 0  ;;  %v2935_v15 = vsel %vm309_vm9, %v555_v13, 0  ;;  %v944_v43 = vunpack.c.l.b16 %v936_v57 }
 0x258   :  { %v503_v5 = vmul.f32 %v3349_v33, %v2683_v63  ;;  %983 = vrot.lane.b32.xlu0 %v976_v28, %s2276_s29  ;;  %v965_v4 = vunpack.c.l.b16 %v951_v24  ;;  %v966_v46 = vunpack.c.l.b16 %v953_v10  ;;  %v828_v0 = vunpack.c.l.b16 %v818_v22 }
 0x259   :  { %v574_v17 = vunpack.c.l.b16 %v2932_v58  ;;  %v575_v51 = vunpack.c.l.b16 %v2935_v15  ;;  %v949_v38 = vpack.c.b16 %v944_v43, %v944_v43  ;;  %v3350_v25 = vunpack.i.h.bf16 %v2517_v1 }
 0x25a   :  { %v975_v27 = vpack.c.b16 %v966_v46, %v965_v4  ;;  %v836_v54 = vpack.c.b16 %v828_v0, %v828_v0  ;;  %v547_v19 = vunpack.c.l.b16 %v2848_v8  ;;  %v548_v31 = vunpack.c.h.b16 %v2848_v8 }
 0x25b   :  { %v2942_v3 = vmul.f32 %v3350_v25, %v503_v5  ;;  %v583_v55 = vpack.c.b16 %v575_v51, %v574_v17  ;;  %v255_v22 = vmul.f32 %v2177_v30, %v2683_v63  ;;  %v3351_v6 = vunpack.i.h.bf16 %v2557_v21 }
 0x25c   :  { %v2955_v1 = vsel %vm309_vm9, %v949_v38, 0  ;;  %v1171_v53 = vunpack.c.l.b16 %v2868_v49  ;;  %v1172_v40 = vunpack.c.h.b16 %v2868_v49  ;;  %v3352_v21 = vunpack.i.h.bf16 %v2585_v42 }
 0x25d   :  { %v1141_v20 = vmul.f32 %v3351_v6, %v2683_v63  ;;  %v2962_v26 = vmul.f32 %v2198_v11, %v255_v22  ;;  %v972_v8 = vunpack.c.h.b16 %v2898_v59  ;;  %v973_v9 = vunpack.c.h.b16 %v2908_v41 }
 0x25e   :  { %v685_v35 = vunpack.c.h.b16 %v2858_v60  ;;  %v969_v36 = vunpack.c.l.b16 %v2955_v1  ;;  %v552_v39 = vpack.c.b16 %v547_v19, %v547_v19  ;;  %v553_v49 = vpack.c.b16 %v548_v31, %v548_v31 }
 0x25f   :  { %981 = vrot.lane.b32.xlu2 %v975_v27, %s2276_s29  ;;  %844 = vrot.lane.b32.xlu1 %v836_v54, %s2275_s28  ;;  %v2966_v30 = vmul.f32 %v3352_v21, %v1141_v20  ;;  %v1176_v18 = vpack.c.b16 %v1171_v53, %v1171_v53  ;;  %v1177_v50 = vpack.c.b16 %v1172_v40, %v1172_v40  ;;  %v299_v41 = vunpack.c.l.b16 %v2912_v2 }
 0x260   :  { %590 = vrot.lane.b32.xlu0 %v583_v55, %s2272_s1  ;;  %v979_v14 = vpack.c.b16 %v973_v9, %v972_v8  ;;  %v691_v29 = vpack.c.b16 %v685_v35, %v685_v35  ;;  %v977_v11 = vpack.c.b16 %v969_v36, %v969_v36  ;;  %v558_v37 = vsel %vm309_vm9, %v552_v39, 0 }
 0x261   :  { %v560_v42 = vsel %vm309_vm9, %v553_v49, 0  ;;  %v2977_v59 = vsel %vm309_vm9, %v1176_v18, 0  ;;  %v2980_v60 = vsel %vm309_vm9, %v1177_v50, 0  ;;  %v300_v16 = vunpack.c.h.b16 %v2912_v2  ;;  %v3353_v2 = vld [vmem:[#allocation9_spill] sm:$0xff] }
 0x262   :  { %v572_v61 = vunpack.c.l.b16 %v558_v37  ;;  %v573_v7 = vunpack.c.l.b16 %v560_v42  ;;  %v970_v56 = vunpack.c.h.b16 %v951_v24  ;;  %v971_v23 = vunpack.c.h.b16 %v953_v10 }
 0x263   :  { %v1196_v52 = vunpack.c.l.b16 %v2977_v59  ;;  %v1197_v44 = vunpack.c.l.b16 %v2980_v60  ;;  %v304_v32 = vpack.c.b16 %v299_v41, %v299_v41  ;;  %v305_v48 = vpack.c.b16 %v300_v16, %v300_v16 }
 0x264   :  { %v582_v47 = vpack.c.b16 %v573_v7, %v572_v61  ;;  %v978_v13 = vpack.c.b16 %v971_v23, %v970_v56  ;;  %v1169_v62 = vunpack.c.l.b16 %v2920_v12  ;;  %v1170_v45 = vunpack.c.h.b16 %v2920_v12 }
 0x265   :  { %v1205_v57 = vpack.c.b16 %v1197_v44, %v1196_v52  ;;  %v3354_v33 = vunpack.i.h.bf16 %v3353_v2  ;;  %v2995_v28 = vsel %vm309_vm9, %v304_v32, 0  ;;  %v2998_v24 = vsel %vm309_vm9, %v305_v48, 0 }
 0x266   :  { %v301_v10 = vunpack.c.l.b16 %v2922_v34  ;;  %v302_v43 = vunpack.c.h.b16 %v2922_v34  ;;  %v579_v12 = vunpack.c.h.b16 %v2932_v58  ;;  %v577_v4 = vunpack.c.h.b16 %v558_v37 }
 0x267   :  { %989 = vrot.lane.b32.xlu2 %v979_v14, %s2276_s29  ;;  %702 = vrot.lane.b32.xlu1 %v691_v29, %s2274_s27  ;;  %v399_v5 = vmul.f32 %v3354_v33, %v2683_v63  ;;  %v580_v63 = vunpack.c.h.b16 %v2935_v15  ;;  %v578_v46 = vunpack.c.h.b16 %v560_v42  ;;  %v326_v0 = vunpack.c.l.b16 %v2995_v28 }
 0x268   :  { %985 = vrot.lane.b32.xlu0 %v977_v11, %s2276_s29  ;;  %v327_v17 = vunpack.c.l.b16 %v2998_v24  ;;  %v1174_v51 = vpack.c.b16 %v1169_v62, %v1169_v62  ;;  %v1175_v38 = vpack.c.b16 %v1170_v45, %v1170_v45  ;;  %v306_v25 = vpack.c.b16 %v301_v10, %v301_v10 }
 0x269   :  { %v307_v27 = vpack.c.b16 %v302_v43, %v302_v43  ;;  %v402_v54 = vpack.c.bf16 %v399_v5, %v399_v5  ;;  %v586_v19 = vpack.c.b16 %v580_v63, %v579_v12  ;;  %v585_v55 = vpack.c.b16 %v578_v46, %v577_v4 }
 0x26a   :  { %v336_v34 = vpack.c.b16 %v327_v17, %v326_v0  ;;  %v1180_v31 = vsel %vm309_vm9, %v1174_v51, 0  ;;  %v1182_v58 = vsel %vm309_vm9, %v1175_v38, 0  ;;  %v316_v15 = vsel %vm309_vm9, %v306_v25, 0 }
 0x26b   :  { %v318_v22 = vsel %vm309_vm9, %v307_v27, 0  ;;  %v410_v6 = vunpack.c.l.b16 %v402_v54  ;;  %v1194_v20 = vunpack.c.l.b16 %v1180_v31  ;;  %v1195_v53 = vunpack.c.l.b16 %v1182_v58 }
 0x26c   :  { %v974_v40 = vunpack.c.h.b16 %v2955_v1  ;;  %v333_v21 = vunpack.c.h.b16 %v316_v15  ;;  %v334_v8 = vunpack.c.h.b16 %v318_v22  ;;  %v543_v35 = vpack.c.bf16 %v2942_v3, %v2942_v3 }
 0x26d   :  { %v415_v9 = vpack.c.b16 %v410_v6, %v410_v6  ;;  %v1204_v36 = vpack.c.b16 %v1195_v53, %v1194_v20  ;;  %v1201_v1 = vunpack.c.h.b16 %v2977_v59  ;;  %v1202_v14 = vunpack.c.h.b16 %v2980_v60 }
 0x26e   :  { %v980_v39 = vpack.c.b16 %v974_v40, %v974_v40  ;;  %v340_v49 = vpack.c.b16 %v334_v8, %v333_v21  ;;  %v551_v50 = vunpack.c.l.b16 %v543_v35  ;;  %v1199_v29 = vunpack.c.h.b16 %v1180_v31 }
 0x26f   :  { %588 = vrot.lane.b32.xlu2 %v582_v47, %s2272_s1  ;;  %987 = vrot.lane.b32.xlu1 %v978_v13, %s2276_s29  ;;  %v425_v18 = vsel %vm309_vm9, %v415_v9, 0  ;;  %v1200_v11 = vunpack.c.h.b16 %v1182_v58  ;;  %v1165_v3 = vpack.c.bf16 %v2966_v30, %v2966_v30  ;;  %v295_v41 = vpack.c.bf16 %v2962_v26, %v2962_v26 }
 0x270   :  { %1212 = vrot.lane.b32.xlu0 %v1205_v57, %s2278_s12  ;;  %v435_v37 = vunpack.c.l.b16 %v425_v18  ;;  %v556_v42 = vpack.c.b16 %v551_v50, %v551_v50  ;;  %v1208_v16 = vpack.c.b16 %v1202_v14, %v1201_v1  ;;  %v331_v30 = vunpack.c.h.b16 %v2995_v28 }
 0x271   :  { %v1207_v61 = vpack.c.b16 %v1200_v11, %v1199_v29  ;;  %v1173_v56 = vunpack.c.l.b16 %v1165_v3  ;;  %v303_v60 = vunpack.c.l.b16 %v295_v41  ;;  %v332_v52 = vunpack.c.h.b16 %v2998_v24 }
 0x272   :  { %v443_v7 = vpack.c.b16 %v435_v37, %v435_v37  ;;  %v566_v59 = vsel %vm309_vm9, %v556_v42, 0  ;;  %v328_v26 = vunpack.c.l.b16 %v316_v15  ;;  %v329_v44 = vunpack.c.l.b16 %v318_v22 }
 0x273   :  { %v581_v32 = vunpack.c.h.b16 %v566_v59  ;;  %v1178_v48 = vpack.c.b16 %v1173_v56, %v1173_v56  ;;  %v308_v47 = vpack.c.b16 %v303_v60, %v303_v60  ;;  %v339_v13 = vpack.c.b16 %v332_v52, %v331_v30 }
 0x274   :  { %v337_v57 = vpack.c.b16 %v329_v44, %v328_v26  ;;  %v576_v5 = vunpack.c.l.b16 %v566_v59  ;;  %v440_v27 = vunpack.c.h.b16 %v425_v18 }
 0x275   :  { %v587_v62 = vpack.c.b16 %v581_v32, %v581_v32  ;;  %v1188_v45 = vsel %vm309_vm9, %v1178_v48, 0  ;;  %v320_v2 = vsel %vm309_vm9, %v308_v47, 0 }
 0x276   :  { %v1198_v28 = vunpack.c.l.b16 %v1188_v45  ;;  %v335_v43 = vunpack.c.h.b16 %v320_v2  ;;  %v584_v46 = vpack.c.b16 %v576_v5, %v576_v5  ;;  %v1203_v25 = vunpack.c.h.b16 %v1188_v45 }
 0x277   :  { %596 = vrot.lane.b32.xlu2 %v586_v19, %s2272_s1  ;;  %594 = vrot.lane.b32.xlu1 %v585_v55, %s2272_s1  ;;  %v446_v55 = vpack.c.b16 %v440_v27, %v440_v27  ;;  %v330_v58 = vunpack.c.l.b16 %v320_v2 }
 0x278   :  { %342 = vrot.lane.b32.xlu0 %v336_v34, %s2280_s13  ;;  %v1206_v0 = vpack.c.b16 %v1198_v28, %v1198_v28  ;;  %v341_v51 = vpack.c.b16 %v335_v43, %v335_v43  ;;  %v1209_v19 = vpack.c.b16 %v1203_v25, %v1203_v25 }
 0x279   :  { %v338_v9 = vpack.c.b16 %v330_v58, %v330_v58 }
 0x27f   :  { %1210 = vrot.lane.b32.xlu2 %v1204_v36, %s2278_s12  ;;  %991 = vrot.lane.b32.xlu1 %v980_v39, %s2276_s29 }
 0x280   :  { %350 = vrot.lane.b32.xlu0 %v340_v49, %s2280_s13 }
 0x287   :  { %1218 = vrot.lane.b32.xlu2 %v1208_v16, %s2278_s12  ;;  %1216 = vrot.lane.b32.xlu1 %v1207_v61, %s2278_s12  ;;  %v3031_v23 = vpop.permute.xlu2 %1087 }
 0x288   :  { %451 = vrot.lane.b32.xlu0 %v443_v7, %s2273_s2  ;;  %v1098_v12 = vrot.slane %v3031_v23, 4 }
 0x28f   :  { %348 = vrot.lane.b32.xlu2 %v339_v13, %s2280_s13  ;;  %344 = vrot.lane.b32.xlu1 %v337_v57, %s2280_s13  ;;  %v847_v33 = vpop.permute.xlu2 %846 }
 0x290   :  { %598 = vrot.lane.b32.xlu0 %v587_v62, %s2272_s1  ;;  %v1086_v24 = vpop.permute.xlu1 %1085  ;;  %v1092_v10 = vpop.permute.xlu0 %1091  ;;  %v855_v20 = vrot.slane %v847_v33, 4 }
 0x291   :  { %v1097_v63 = vrot.slane %v1086_v24, 4  ;;  %v1100_v15 = vrot.slane %v1092_v10, 4 }
 0x293   :  { %v1103_v4 = vsel %vm130_vm1, %v1097_v63, %v1098_v12 }
 0x294   :  { %v1105_v17 = vsel %vm386_vm14, %v1086_v24, %v1103_v4 }
 0x295   :  { %1116 = vst [vmem:[#allocation2 + $0xe0] sm:$0xff] %v1105_v17 }
 0x297   :  { %592 = vrot.lane.b32.xlu2 %v584_v46, %s2272_s1  ;;  %1214 = vrot.lane.b32.xlu1 %v1206_v0, %s2278_s12 }
 0x298   :  { %352 = vrot.lane.b32.xlu0 %v341_v51, %s2280_s13  ;;  %v3046_v38 = vpop.permute.xlu2 %694  ;;  %v841_v54 = vpop.permute.xlu0 %840 }
 0x299   :  { %v852_v49 = vrot.slane %v841_v54, 4  ;;  %v705_v7 = vrot.slane %v3046_v38, 4 }
 0x29c   :  { %v1985_v14 = vld [vmem:[#allocation2 + $0xe0] sm:$0xf]  ;;  %v2055_v37 = vld [vmem:[#allocation2 + $0xe4] sm:$0xf] }
 0x29f   :  { %1220 = vrot.lane.b32.xlu2 %v1209_v19, %s2278_s12  ;;  %457 = vrot.lane.b32.xlu1 %v446_v55, %s2273_s2  ;;  %v3050_v34 = vpop.permute.xlu1 %1093 }
 0x2a0   :  { %v448_v31 = vpop.permute.xlu2 %447  ;;  %v1101_v22 = vrot.slane %v3050_v34, 4  ;;  %v849_v6 = vpop.permute.xlu0 %848 }
 0x2a1   :  { %v856_v53 = vrot.slane %v849_v6, 4 }
 0x2a2   :  { %v1108_v40 = vsel %vm130_vm1, %v1100_v15, %v1101_v22 }
 0x2a3   :  { %v1109_v21 = vsel %vm386_vm14, %v1092_v10, %v1108_v40  ;;  %v863_v8 = vsel %vm130_vm1, %v855_v20, %v856_v53 }
 0x2a4   :  { %1118 = vst [vmem:[#allocation2 + $0xf0] sm:$0xff] %v1109_v21  ;;  %v864_v35 = vsel %vm631_vm13, %v847_v33, %v863_v8  ;;  %v459_v33 = vrot.slane %v448_v31, 4 }
 0x2a5   :  { %873 = vst [vmem:[#allocation2 + $0xb0] sm:$0xff] %v864_v35 }
 0x2a7   :  { %346 = vrot.lane.b32.xlu2 %v338_v9, %s2280_s13  ;;  %v3060_v36 = vpop.permute.xlu1 %842 }
 0x2a8   :  { %v3062_v39 = vpop.permute.xlu2 %455  ;;  %v853_v18 = vrot.slane %v3060_v36, 4  ;;  %v699_v50 = vpop.permute.xlu0 %698 }
 0x2a9   :  { %v707_v62 = vrot.slane %v699_v50, 4  ;;  %v463_v19 = vrot.slane %v3062_v39, 4 }
 0x2aa   :  { %v858_v1 = vsel %vm130_vm1, %v852_v49, %v853_v18 }
 0x2ab   :  { %v860_v29 = vsel %vm631_vm13, %v841_v54, %v858_v1  ;;  %v2057_v11 = vld [vmem:[#allocation2 + $0xec] sm:$0xf0]  ;;  %v1987_v3 = vld [vmem:[#allocation2 + $0xf0] sm:$0xf0] }
 0x2ac   :  { %871 = vst [vmem:[#allocation2 + $0xa0] sm:$0xff] %v860_v29  ;;  %v1986_v42 = vor.u32 %v2057_v11, %v1985_v14  ;;  %v1990_v41 = vor.u32 %v2055_v37, %v1987_v3 }
 0x2ae   :  { %1469 = vmatpush.bf16.msrb.mxu0 %v1986_v42  ;;  %1495 = vmatpush.bf16.msrb.mxu2 %v1990_v41 }
 0x2b0   :  { %v693_v61 = vpop.permute.xlu1 %692 }
 0x2b1   :  { %v851_v16 = vpop.permute.xlu2 %850  ;;  %v1090_v59 = vpop.permute.xlu0 %1089  ;;  %v704_v60 = vrot.slane %v693_v61, 4 }
 0x2b2   :  { %v857_v56 = vrot.slane %v851_v16, 4  ;;  %v1099_v30 = vrot.slane %v1090_v59, 4 }
 0x2b3   :  { %v710_v26 = vsel %vm130_vm1, %v704_v60, %v705_v7 }
 0x2b4   :  { %v865_v52 = vsel %vm130_vm1, %v856_v53, %v857_v56  ;;  %v1106_v32 = vsel %vm130_vm1, %v1098_v12, %v1099_v30  ;;  %v712_v48 = vsel %vm711_vm7, %v693_v61, %v710_v26 }
 0x2b5   :  { %v866_v44 = vsel %vm631_vm13, %v849_v6, %v865_v52  ;;  %v1107_v47 = vsel %vm386_vm14, %v3031_v23, %v1106_v32  ;;  %723 = vst [vmem:[#allocation2 + $0x60] sm:$0xff] %v712_v48 }
 0x2b6   :  { %874 = vst [vmem:[#allocation2 + $0xb8] sm:$0xff] %v866_v44 }
 0x2b7   :  { %1117 = vst [vmem:[#allocation2 + $0xe8] sm:$0xff] %v1107_v47 }
 0x2b9   :  { %v982_v13 = vpop.permute.xlu2 %981  ;;  %v701_v57 = vpop.permute.xlu1 %700 }
 0x2ba   :  { %v3077_v45 = vpop.permute.xlu0 %449  ;;  %v708_v2 = vrot.slane %v701_v57, 4  ;;  %v993_v58 = vrot.slane %v982_v13, 4 }
 0x2bb   :  { %v460_v5 = vrot.slane %v3077_v45, 4 }
 0x2bc   :  { %v715_v28 = vsel %vm130_vm1, %v707_v62, %v708_v2 }
 0x2bd   :  { %v465_v24 = vsel %vm130_vm1, %v459_v33, %v460_v5  ;;  %v716_v10 = vsel %vm711_vm7, %v699_v50, %v715_v28 }
 0x2be   :  { %v467_v23 = vsel %vm466_vm2, %v448_v31, %v465_v24  ;;  %725 = vst [vmem:[#allocation2 + $0x70] sm:$0xff] %v716_v10 }
 0x2bf   :  { %478 = vst [vmem:[#allocation2 + $0x20] sm:$0xff] %v467_v23 }
 0x2c1   :  { %v3086_v43 = vpop.permute.xlu2 %989  ;;  %v1096_v12 = vpop.permute.xlu1 %1095 }
 0x2c2   :  { %v697_v63 = vpop.permute.xlu0 %696  ;;  %v1102_v4 = vrot.slane %v1096_v12, 4 }
 0x2c3   :  { %v706_v46 = vrot.slane %v697_v63, 4 }
 0x2c4   :  { %v1110_v0 = vsel %vm130_vm1, %v1101_v22, %v1102_v4  ;;  %v1953_v4 = vld [vmem:[#allocation2 + $0xa0] sm:$0xf] }
 0x2c5   :  { %v713_v17 = vsel %vm130_vm1, %v705_v7, %v706_v46  ;;  %v1111_v51 = vsel %vm386_vm14, %v3050_v34, %v1110_v0  ;;  %v997_v7 = vrot.slane %v3086_v43, 4  ;;  %v2047_v46 = vld [vmem:[#allocation2 + $0xa4] sm:$0xf]  ;;  %v1245_v0 = vld [vmem:[%s3303_s5] sm:$0xf] }
 0x2c6   :  { %v714_v25 = vsel %vm711_vm7, %v3046_v38, %v713_v17  ;;  %1119 = vst [vmem:[#allocation2 + $0xf8] sm:$0xff] %v1111_v51 }
 0x2c7   :  { %724 = vst [vmem:[#allocation2 + $0x68] sm:$0xff] %v714_v25  ;;  %v2049_v25 = vld [vmem:[#allocation2 + $0xac] sm:$0xf0] }
 0x2c8   :  { %1283 = vst [vmem:[#allocation1] ss:$4 sm:$0xff] %v1245_v0 }
 0x2c9   :  { %v589_v27 = vpop.permute.xlu2 %588  ;;  %v454_v54 = vpop.permute.xlu1 %453 }
 0x2ca   :  { %v984_v55 = vpop.permute.xlu0 %983  ;;  %v462_v31 = vrot.slane %v454_v54, 4  ;;  %v600_v8 = vrot.slane %v589_v27, 4 }
 0x2cb   :  { %v994_v15 = vrot.slane %v984_v55, 4 }
 0x2cc   :  { %v470_v22 = vsel %vm130_vm1, %v462_v31, %v463_v19 }
 0x2cd   :  { %v999_v6 = vsel %vm130_vm1, %v993_v58, %v994_v15  ;;  %v471_v34 = vsel %vm466_vm2, %v454_v54, %v470_v22  ;;  %v1954_v58 = vor.u32 %v2049_v25, %v1953_v4  ;;  %v1937_v22 = vld [vmem:[#allocation2 + $0x80] sm:$0xf] }
 0x2ce   :  { %v1001_v38 = vsel %vm490_vm8, %v982_v13, %v999_v6  ;;  %480 = vst [vmem:[#allocation2 + $0x30] sm:$0xff] %v471_v34  ;;  %v2045_v6 = vld [vmem:[#allocation2 + $0x8c] sm:$0xf0] }
 0x2cf   :  { %1012 = vst [vmem:[#allocation2 + $0xc0] sm:$0xff] %v1001_v38 }
 0x2d1   :  { %v3103_v20 = vpop.permute.xlu2 %596  ;;  %v845_v53 = vpop.permute.xlu1 %844 }
 0x2d2   :  { %v3105_v40 = vpop.permute.xlu0 %590  ;;  %v854_v21 = vrot.slane %v845_v53, 4  ;;  %v604_v13 = vrot.slane %v3103_v20, 4  ;;  %v2043_v53 = vld [vmem:[#allocation2 + $0x84] sm:$0xf] }
 0x2d3   :  { %v601_v9 = vrot.slane %v3105_v40, 4 }
 0x2d4   :  { %v861_v35 = vsel %vm130_vm1, %v853_v18, %v854_v21  ;;  %v1939_v21 = vld [vmem:[#allocation2 + $0x90] sm:$0xf0] }
 0x2d5   :  { %v606_v49 = vsel %vm130_vm1, %v600_v8, %v601_v9  ;;  %v862_v50 = vsel %vm631_vm13, %v3060_v36, %v861_v35 }
 0x2d6   :  { %v608_v1 = vsel %vm607_vm3, %v589_v27, %v606_v49  ;;  %872 = vst [vmem:[#allocation2 + $0xa8] sm:$0xff] %v862_v50  ;;  %v1969_v33 = vld [vmem:[#allocation2 + $0xc0] sm:$0xf]  ;;  %v2051_v10 = vld [vmem:[#allocation2 + $0xc4] sm:$0xf] }
 0x2d7   :  { %619 = vst [vmem:[#allocation2 + $0x40] sm:$0xff] %v608_v1  ;;  %v1955_v27 = vld [vmem:[#allocation2 + $0xb0] sm:$0xf0] }
 0x2d9   :  { %v1211_v14 = vpop.permute.xlu2 %1210  ;;  %v703_v29 = vpop.permute.xlu1 %702 }
 0x2da   :  { %v986_v11 = vpop.permute.xlu0 %985  ;;  %v709_v37 = vrot.slane %v703_v29, 4  ;;  %v1222_v60 = vrot.slane %v1211_v14, 4  ;;  %v1938_v29 = vor.u32 %v2045_v6, %v1937_v22 }
 0x2db   :  { %v995_v3 = vrot.slane %v986_v11, 4  ;;  %v1942_v11 = vor.u32 %v2043_v53, %v1939_v21  ;;  %v2058_v21 = vld [vmem:[#allocation2 + $0xf4] sm:$0xf0] }
 0x2dc   :  { %v717_v42 = vsel %vm130_vm1, %v708_v2, %v709_v37  ;;  %v1923_v37 = vld [vmem:[#allocation2 + $0x70] sm:$0xf0] }
 0x2dd   :  { %v1002_v18 = vsel %vm130_vm1, %v994_v15, %v995_v3  ;;  %v718_v41 = vsel %vm711_vm7, %v701_v57, %v717_v42  ;;  %v1958_v15 = vor.u32 %v2047_v46, %v1955_v27  ;;  %v1921_v3 = vld [vmem:[#allocation2 + $0x60] sm:$0xf]  ;;  %v2031_v46 = vld [vmem:[#allocation2 + $0x24] sm:$0xf] }
 0x2de   :  { %v1003_v16 = vsel %vm490_vm8, %v984_v55, %v1002_v18  ;;  %726 = vst [vmem:[#allocation2 + $0x78] sm:$0xff] %v718_v41  ;;  %v2039_v41 = vld [vmem:[#allocation2 + $0x64] sm:$0xf] }
 0x2df   :  { %1013 = vst [vmem:[#allocation2 + $0xc8] sm:$0xff] %v1003_v16 }
 0x2e1   :  { %v3121_v36 = vpop.permute.xlu2 %1218  ;;  %v988_v61 = vpop.permute.xlu1 %987 }
 0x2e2   :  { %v3124_v56 = vpop.permute.xlu0 %1212  ;;  %v996_v59 = vrot.slane %v988_v61, 4  ;;  %v1226_v16 = vrot.slane %v3121_v36, 4 }
 0x2e3   :  { %v1223_v30 = vrot.slane %v3124_v56, 4 }
 0x2e4   :  { %v1004_v52 = vsel %vm130_vm1, %v996_v59, %v997_v7  ;;  %v1926_v59 = vor.u32 %v2039_v41, %v1923_v37 }
 0x2e5   :  { %v1228_v26 = vsel %vm130_vm1, %v1222_v60, %v1223_v30  ;;  %v1005_v44 = vsel %vm490_vm8, %v988_v61, %v1004_v52 }
 0x2e6   :  { %v1230_v32 = vsel %vm242_vm11, %v1211_v14, %v1228_v26  ;;  %1014 = vst [vmem:[#allocation2 + $0xd0] sm:$0xff] %v1005_v44 }
 0x2e7   :  { %1241 = vst [vmem:[#allocation2 + $0x100] sm:$0xff] %v1230_v32 }
 0x2e9   :  { %v349_v48 = vpop.permute.xlu2 %348  ;;  %v595_v47 = vpop.permute.xlu1 %594 }
 0x2ea   :  { %v3134_v57 = vpop.permute.xlu0 %342  ;;  %v603_v62 = vrot.slane %v595_v47, 4  ;;  %v357_v34 = vrot.slane %v349_v48, 4 }
 0x2eb   :  { %v354_v0 = vrot.slane %v3134_v57, 4 }
 0x2ec   :  { %v611_v2 = vsel %vm130_vm1, %v603_v62, %v604_v13 }
 0x2ed   :  { %v612_v28 = vsel %vm607_vm3, %v595_v47, %v611_v2  ;;  %v2053_v24 = vld [vmem:[#allocation2 + $0xcc] sm:$0xf0]  ;;  %v1971_v23 = vld [vmem:[#allocation2 + $0xd0] sm:$0xf0]  ;;  %v1905_v2 = vld [vmem:[#allocation2 + $0x40] sm:$0xf] }
 0x2ee   :  { %621 = vst [vmem:[#allocation2 + $0x50] sm:$0xff] %v612_v28  ;;  %v1970_v12 = vor.u32 %v2053_v24, %v1969_v33  ;;  %v1974_v63 = vor.u32 %v2051_v10, %v1971_v23  ;;  %v2035_v33 = vld [vmem:[#allocation2 + $0x44] sm:$0xf]  ;;  %v2033_v23 = vld [vmem:[#allocation2 + $0x2c] sm:$0xf0] }
 0x2ef   :  { %v2001_v6 = vld [vmem:[#allocation2 + $0x100] sm:$0xf]  ;;  %v2059_v53 = vld [vmem:[#allocation2 + $0x104] sm:$0xf] }
 0x2f0   :  { %1470 = vmatpush.bf16.msrb.mxu0 %v1970_v12  ;;  %1496 = vmatpush.bf16.msrb.mxu2 %v1974_v63  ;;  %v1891_v12 = vld [vmem:[#allocation2 + $0x30] sm:$0xf0] }
 0x2f1   :  { %v593_v17 = vpop.permute.xlu2 %592  ;;  %v992_v51 = vpop.permute.xlu1 %991  ;;  %v1894_v27 = vor.u32 %v2031_v46, %v1891_v12 }
 0x2f2   :  { %v602_v54 = vrot.slane %v593_v17, 4  ;;  %v3143_v55 = vpop.permute.xlu0 %350  ;;  %v998_v31 = vrot.slane %v992_v51, 4 }
 0x2f3   :  { %v358_v38 = vrot.slane %v3143_v55, 4 }
 0x2f4   :  { %v609_v8 = vsel %vm130_vm1, %v601_v9, %v602_v54  ;;  %v1006_v35 = vsel %vm130_vm1, %v997_v7, %v998_v31  ;;  %1471 = vmatpush.bf16.msrb.mxu0 %v1954_v58  ;;  %1497 = vmatpush.bf16.msrb.mxu2 %v1958_v15  ;;  %v2041_v9 = vld [vmem:[#allocation2 + $0x6c] sm:$0xf0] }
 0x2f5   :  { %v610_v49 = vsel %vm607_vm3, %v3105_v40, %v609_v8  ;;  %v366_v50 = vsel %vm130_vm1, %v357_v34, %v358_v38  ;;  %v1007_v1 = vsel %vm490_vm8, %v3086_v43, %v1006_v35  ;;  %v1922_v18 = vor.u32 %v2041_v9, %v1921_v3  ;;  %v2037_v52 = vld [vmem:[#allocation2 + $0x4c] sm:$0xf0]  ;;  %v1907_v26 = vld [vmem:[#allocation2 + $0x50] sm:$0xf0]  ;;  %v1977_v3 = vld [vmem:[#allocation2 + $0xc8] sm:$0xf] }
 0x2f6   :  { %620 = vst [vmem:[#allocation2 + $0x48] sm:$0xff] %v610_v49  ;;  %v367_v14 = vsel %vm362_vm10, %v349_v48, %v366_v50  ;;  %v1906_v24 = vor.u32 %v2037_v52, %v1905_v2  ;;  %v1910_v10 = vor.u32 %v2035_v33, %v1907_v26  ;;  %v3180_v9 = vld.sshfl [vmem:[#allocation1 + $0x8] sm:$0xff pattern:$0x73625140]  ;;  %v2056_v52 = vld [vmem:[#allocation2 + $0xec] sm:$0xf] }
 0x2f7   :  { %376 = vst [vmem:[#allocation2 + $0x10] sm:$0xff] %v367_v14  ;;  %v2052_v33 = vld [vmem:[#allocation2 + $0xcc] sm:$0xf] }
 0x2f8   :  { %1015 = vst [vmem:[#allocation2 + $0xd8] sm:$0xff] %v1007_v1  ;;  %1472 = vmatpush.bf16.msrb.mxu0 %v1938_v29  ;;  %1498 = vmatpush.bf16.msrb.mxu2 %v1942_v11  ;;  %v1993_v1 = vld [vmem:[#allocation2 + $0xe8] sm:$0xf] }
 0x2f9   :  { %v1221_v40 = vpop.permute.xlu2 %1220  ;;  %v1217_v42 = vpop.permute.xlu1 %1216 }
 0x2fa   :  { %v1227_v61 = vrot.slane %v1221_v40, 4  ;;  %v452_v43 = vpop.permute.xlu0 %451  ;;  %v1225_v7 = vrot.slane %v1217_v42, 4 }
 0x2fb   :  { %v461_v60 = vrot.slane %v452_v43, 4 }
 0x2fc   :  { %v1235_v44 = vsel %vm130_vm1, %v1226_v16, %v1227_v61  ;;  %v1233_v32 = vsel %vm130_vm1, %v1225_v7, %v1226_v16  ;;  %1473 = vmatpush.bf16.msrb.mxu0 %v1922_v18  ;;  %1499 = vmatpush.bf16.msrb.mxu2 %v1926_v59 }
 0x2fd   :  { %v1236_v48 = vsel %vm242_vm11, %v3121_v36, %v1235_v44  ;;  %v468_v47 = vsel %vm130_vm1, %v460_v5, %v461_v60  ;;  %v1234_v62 = vsel %vm242_vm11, %v1217_v42, %v1233_v32  ;;  %v1889_v36 = vld [vmem:[#allocation2 + $0x20] sm:$0xf]  ;;  %v1995_v42 = vld [vmem:[#allocation2 + $0xf8] sm:$0xf0] }
 0x2fe   :  { %1244 = vst [vmem:[#allocation2 + $0x118] sm:$0xff] %v1236_v48  ;;  %v469_v28 = vsel %vm466_vm2, %v3077_v45, %v468_v47  ;;  %v1890_v5 = vor.u32 %v2033_v23, %v1889_v36  ;;  %v2029_v40 = vld [vmem:[#allocation2 + $0xc] sm:$0xf0]  ;;  %v1875_v7 = vld [vmem:[#allocation2 + $0x10] sm:$0xf0]  ;;  %v1998_v26 = vor.u32 %v2056_v52, %v1995_v42 }
 0x2ff   :  { %479 = vst [vmem:[#allocation2 + $0x28] sm:$0xff] %v469_v28  ;;  %v2054_v11 = vld [vmem:[#allocation2 + $0xd4] sm:$0xf0]  ;;  %v1979_v32 = vld [vmem:[#allocation2 + $0xd8] sm:$0xf0] }
 0x300   :  { %1243 = vst [vmem:[#allocation2 + $0x110] sm:$0xff] %v1234_v62  ;;  %1474 = vmatpush.bf16.msrb.mxu0 %v1906_v24  ;;  %1500 = vmatpush.bf16.msrb.mxu2 %v1910_v10  ;;  %v1978_v16 = vor.u32 %v2054_v11, %v1977_v3  ;;  %v3196_v44 = vld.sshfl [vmem:[#allocation1] sm:$0xff pattern:$0x73625140]  ;;  %v1945_v62 = vld [vmem:[#allocation2 + $0x88] sm:$0xf]  ;;  %v1982_v28 = vor.u32 %v2052_v33, %v1979_v32 }
 0x301   :  { %v347_v63 = vpop.permute.xlu2 %346  ;;  %v345_v4 = vpop.permute.xlu1 %344  ;;  %v2048_v23 = vld [vmem:[#allocation2 + $0xac] sm:$0xf] }
 0x302   :  { %v356_v17 = vrot.slane %v347_v63, 4  ;;  %v599_v51 = vpop.permute.xlu0 %598  ;;  %v355_v25 = vrot.slane %v345_v4, 4 }
 0x303   :  { %v605_v45 = vrot.slane %v599_v51, 4  ;;  %v1963_v51 = vld [vmem:[#allocation2 + $0xb8] sm:$0xf0] }
 0x304   :  { %v361_v54 = vsel %vm130_vm1, %v354_v0, %v355_v25  ;;  %v364_v31 = vsel %vm130_vm1, %v355_v25, %v356_v17  ;;  %1475 = vmatpush.bf16.msrb.mxu0 %v1890_v5  ;;  %1501 = vmatpush.bf16.msrb.mxu2 %v1894_v27  ;;  %v2042_v17 = vld [vmem:[#allocation2 + $0x74] sm:$0xf0]  ;;  %v1966_v25 = vor.u32 %v2048_v23, %v1963_v51  ;;  %v2044_v27 = vld [vmem:[#allocation2 + $0x8c] sm:$0xf] }
 0x305   :  { %v613_v58 = vsel %vm130_vm1, %v604_v13, %v605_v45  ;;  %v363_v15 = vsel %vm362_vm10, %v3134_v57, %v361_v54  ;;  %v365_v22 = vsel %vm362_vm10, %v345_v4, %v364_v31  ;;  %v1994_v13 = vor.u32 %v2058_v21, %v1993_v1  ;;  %v2062_v10 = vld [vmem:[#allocation2 + $0x114] sm:$0xf0]  ;;  %v2011_v5 = vld [vmem:[#allocation2 + $0x118] sm:$0xf0] }
 0x306   :  { %v614_v34 = vsel %vm607_vm3, %v3103_v20, %v613_v58  ;;  %374 = vst [vmem:[#allocation2] sm:$0xff] %v363_v15  ;;  %v1947_v45 = vld [vmem:[#allocation2 + $0x98] sm:$0xf0]  ;;  %v1913_v58 = vld [vmem:[#allocation2 + $0x48] sm:$0xf] }
 0x307   :  { %622 = vst [vmem:[#allocation2 + $0x58] sm:$0xff] %v614_v34  ;;  %v2061_v8 = vld [vmem:[#allocation2 + $0x10c] sm:$0xf0]  ;;  %v2003_v35 = vld [vmem:[#allocation2 + $0x110] sm:$0xf0]  ;;  %v1950_v31 = vor.u32 %v2044_v27, %v1947_v45 }
 0x308   :  { %375 = vst [vmem:[#allocation2 + $0x8] sm:$0xff] %v365_v22  ;;  %v2002_v49 = vor.u32 %v2061_v8, %v2001_v6  ;;  %v2006_v50 = vor.u32 %v2059_v53, %v2003_v35  ;;  %v1931_v15 = vld [vmem:[#allocation2 + $0x78] sm:$0xf0]  ;;  %v1897_v34 = vld [vmem:[#allocation2 + $0x28] sm:$0xf] }
 0x309   :  { %v1215_v14 = vpop.permute.xlu1 %1214  ;;  %v2040_v53 = vld [vmem:[#allocation2 + $0x6c] sm:$0xf] }
 0x30a   :  { %1489 = vmatpush.bf16.msrb.mxu1 %v2002_v49  ;;  %1515 = vmatpush.bf16.msrb.mxu3 %v2006_v50  ;;  %v353_v57 = vpop.permute.xlu0 %352  ;;  %v1224_v29 = vrot.slane %v1215_v14, 4  ;;  %v1934_v8 = vor.u32 %v2040_v53, %v1931_v15  ;;  %v2036_v50 = vld [vmem:[#allocation2 + $0x4c] sm:$0xf] }
 0x30b   :  { %v359_v20 = vrot.slane %v353_v57, 4 }
 0x30c   :  { %v1231_v37 = vsel %vm130_vm1, %v1223_v30, %v1224_v29  ;;  %v2032_v29 = vld [vmem:[#allocation2 + $0x2c] sm:$0xf] }
 0x30d   :  { %v368_v18 = vsel %vm130_vm1, %v358_v38, %v359_v20  ;;  %v1232_v41 = vsel %vm242_vm11, %v3124_v56, %v1231_v37  ;;  %v1873_v61 = vld [vmem:[#allocation2] sm:$0xf]  ;;  %v2027_v43 = vld [vmem:[#allocation2 + $0x4] sm:$0xf]  ;;  %2016 = vmatmul.msk.bf16.vlgmr.msrb.gmra.mxu3 %vm72_vm0, %v3180_v9  ;;  %2015 = vmatmul.msk.bf16.vlgmr.msrb.gmra.mxu1 %vm72_vm0, %v3180_v9  ;;  %v1961_v38 = vld [vmem:[#allocation2 + $0xa8] sm:$0xf] }
 0x30e   :  { %1521 = vmatpush.bf16.msra.mxu1 %v1994_v13  ;;  %v369_v30 = vsel %vm362_vm10, %v3143_v55, %v368_v18  ;;  %1242 = vst [vmem:[#allocation2 + $0x108] sm:$0xff] %v1232_v41  ;;  %v1874_v59 = vor.u32 %v2029_v40, %v1873_v61  ;;  %v1878_v60 = vor.u32 %v2027_v43, %v1875_v7  ;;  %v2050_v56 = vld [vmem:[#allocation2 + $0xb4] sm:$0xf0]  ;;  %v1915_v35 = vld [vmem:[#allocation2 + $0x58] sm:$0xf0] }
 0x30f   :  { %377 = vst [vmem:[#allocation2 + $0x18] sm:$0xff] %v369_v30  ;;  %v1962_v48 = vor.u32 %v2050_v56, %v1961_v38  ;;  %v2046_v55 = vld [vmem:[#allocation2 + $0x94] sm:$0xf0]  ;;  %v1918_v1 = vor.u32 %v2036_v50, %v1915_v35  ;;  %v1881_v13 = vld [vmem:[#allocation2 + $0x8] sm:$0xf] }
 0x310   :  { %1476 = vmatpush.bf16.msrb.mxu0 %v1874_v59  ;;  %1502 = vmatpush.bf16.msrb.mxu2 %v1878_v60  ;;  %v1946_v36 = vor.u32 %v2046_v55, %v1945_v62  ;;  %v2028_v37 = vld [vmem:[#allocation2 + $0xc] sm:$0xf] }
 0x311   :  { %v458_v47 = vpop.permute.xlu1 %457 }
 0x312   :  { %1522 = vmatpush.bf16.msra.mxu1 %v1978_v16  ;;  %v464_v2 = vrot.slane %v458_v47, 4 }
 0x313   :  { %1503 = vmatmul.bf16.vlgmr.msrb.gmra.mxu2 %v3196_v44  ;;  %1477 = vmatmul.bf16.vlgmr.msrb.gmra.mxu0 %v3196_v44 }
 0x314   :  { %1547 = vmatpush.bf16.msra.mxu0 %v1998_v26  ;;  %v472_v24 = vsel %vm130_vm1, %v463_v19, %v464_v2  ;;  %v1929_v19 = vld [vmem:[#allocation2 + $0x68] sm:$0xf] }
 0x315   :  { %v473_v12 = vsel %vm466_vm2, %v3062_v39, %v472_v24  ;;  %v2009_v63 = vld [vmem:[#allocation2 + $0x108] sm:$0xf]  ;;  %v2060_v4 = vld [vmem:[#allocation2 + $0x10c] sm:$0xf]  ;;  %v1930_v54 = vor.u32 %v2042_v17, %v1929_v19  ;;  %v2038_v39 = vld [vmem:[#allocation2 + $0x54] sm:$0xf0] }
 0x316   :  { %1523 = vmatpush.bf16.msra.mxu1 %v1962_v48  ;;  %481 = vst [vmem:[#allocation2 + $0x38] sm:$0xff] %v473_v12  ;;  %v2010_v46 = vor.u32 %v2062_v10, %v2009_v63  ;;  %v2014_v0 = vor.u32 %v2060_v4, %v2011_v5  ;;  %v1914_v22 = vor.u32 %v2038_v39, %v1913_v58  ;;  %v2030_v49 = vld [vmem:[#allocation2 + $0x14] sm:$0xf0]  ;;  %v1883_v20 = vld [vmem:[#allocation2 + $0x18] sm:$0xf0]  ;;  %vm1648_vm2 = vcmask 31744  }
 0x317   :  { %v1882_v57 = vor.u32 %v2030_v49, %v1881_v13  ;;  %v1886_v3 = vor.u32 %v2028_v37, %v1883_v20 }
 0x318   :  { %1548 = vmatpush.bf16.msra.mxu0 %v1982_v28  ;;  %1541 = vmatpush.bf16.msra.mxu3 %v2010_v46 }
 0x319   :  { %1567 = vmatpush.bf16.msra.mxu2 %v2014_v0 }
 0x31a   :  { %1524 = vmatpush.bf16.msra.mxu1 %v1946_v36 }
 0x31c   :  { %1549 = vmatpush.bf16.msra.mxu0 %v1966_v25 }
 0x31d   :  { %2017 = vmatmul.msk.bf16.vlgmr.msra.gmra.mxu3 %vm72_vm0, %v3180_v9  ;;  %v2034_v6 = vld [vmem:[#allocation2 + $0x34] sm:$0xf0]  ;;  %v1899_v14 = vld [vmem:[#allocation2 + $0x38] sm:$0xf0] }
 0x31e   :  { %1525 = vmatpush.bf16.msra.mxu1 %v1930_v54  ;;  %v1898_v21 = vor.u32 %v2034_v6, %v1897_v34  ;;  %v1902_v11 = vor.u32 %v2032_v29, %v1899_v14 }
 0x320   :  { %1550 = vmatpush.bf16.msra.mxu0 %v1950_v31 }
 0x322   :  { %1526 = vmatpush.bf16.msra.mxu1 %v1914_v22 }
 0x323   :  { %2018 = vmatmul.msk.bf16.vlgmr.msra.gmra.mxu2 %vm72_vm0, %v3180_v9 }
 0x324   :  { %1551 = vmatpush.bf16.msra.mxu0 %v1934_v8 }
 0x326   :  { %1527 = vmatpush.bf16.msra.mxu1 %v1898_v21  ;;  %v1573_v21 = vld [vmem:[%s3304_s6] sm:$0xf] }
 0x328   :  { %1552 = vmatpush.bf16.msra.mxu0 %v1918_v1  ;;  %v1574_v1 = vld [vmem:[%s3305_s7] sm:$0xf] }
 0x32a   :  { %1528 = vmatpush.bf16.msra.mxu1 %v1882_v57 }
 0x32c   :  { %1553 = vmatpush.bf16.msra.mxu0 %v1902_v11 }
 0x32d   :  { %1529 = vmatmul.bf16.vlgmr.msra.gmra.mxu1 %v3196_v44 }
 0x330   :  { %1554 = vmatpush.bf16.msra.mxu0 %v1886_v3 }
 0x333   :  { %1555 = vmatmul.bf16.vlgmr.msra.gmra.mxu0 %v3196_v44 }
 0x38a   :  { %v1491_v40 = vpop.f32.mrf.mxu1 }
 0x390   :  { %v1517_v42 = vpop.f32.mrf.mxu3  ;;  %v1478_v9 = vpop.f32.mrf.mxu0 }
 0x391   :  { %v1492_v30 = vadd.f32 %v1491_v40, %v1478_v9 }
 0x392   :  { %v1493_v18 = vpop.f32.mrf.mxu1 }
 0x393   :  { %v1585_v52 = vmul.f32 %v1492_v30, %v1492_v30  ;;  %v1575_v48 = vsel %vm130_vm1, %v1492_v30, 0.0 }
 0x395   :  { %v1589_v2 = vsel %vm130_vm1, %v1585_v52, 0.0 }
 0x396   :  { %v1504_v41 = vpop.f32.mrf.mxu2 }
 0x397   :  { %v1518_v59 = vadd.f32 %v1517_v42, %v1504_v41 }
 0x398   :  { %v1519_v16 = vpop.f32.mrf.mxu3  ;;  %v1480_v61 = vpop.f32.mrf.mxu0 }
 0x399   :  { %v1586_v56 = vmul.f32 %v1518_v59, %v1518_v59  ;;  %v1576_v44 = vsel %vm130_vm1, %v1518_v59, 0.0 }
 0x39a   :  { %v1577_v28 = vadd.f32 %v1576_v44, %v1575_v48 }
 0x39b   :  { %v1590_v55 = vsel %vm130_vm1, %v1586_v56, 0.0 }
 0x39c   :  { %v1591_v63 = vadd.f32 %v1590_v55, %v1589_v2 }
 0x39e   :  { %v1506_v43 = vpop.f32.mrf.mxu2 }
 0x3a0   :  { %v1543_v7 = vpop.f32.mrf.mxu3 }
 0x3a6   :  { %v1569_v60 = vpop.f32.mrf.mxu2 }
 0x3a8   :  { %v1545_v32 = vpop.f32.mrf.mxu3 }
 0x3aa   :  { %v1530_v38 = vpop.f32.mrf.mxu1 }
 0x3ab   :  { %v1544_v26 = vadd.f32 %v1543_v7, %v1530_v38 }
 0x3ad   :  { %v1587_v47 = vmul.f32 %v1544_v26, %v1544_v26  ;;  %v1578_v62 = vsel %vm130_vm1, %v1544_v26, 0.0 }
 0x3ae   :  { %v1571_v10 = vpop.f32.mrf.mxu2  ;;  %v1579_v36 = vadd.f32 %v1578_v62, %v1577_v28 }
 0x3af   :  { %v1592_v23 = vsel %vm130_vm1, %v1587_v47, 0.0 }
 0x3b0   :  { %v1556_v33 = vpop.f32.mrf.mxu0  ;;  %v1593_v0 = vadd.f32 %v1592_v23, %v1591_v63 }
 0x3b1   :  { %v1570_v24 = vadd.f32 %v1569_v60, %v1556_v33 }
 0x3b2   :  { %v1532_v12 = vpop.f32.mrf.mxu1 }
 0x3b3   :  { %v1580_v4 = vsel %vm130_vm1, %v1570_v24, 0.0  ;;  %v1588_v5 = vmul.f32 %v1570_v24, %v1570_v24 }
 0x3b4   :  { %v1581_v46 = vadd.f32 %v1580_v4, %v1579_v36 }
 0x3b5   :  { %v1594_v17 = vsel %vm130_vm1, %v1588_v5, 0.0 }
 0x3b6   :  { %1582 = vadd.xlane.f32.xlu1 %v1581_v46  ;;  %v1595_v51 = vadd.f32 %v1594_v17, %v1593_v0 }
 0x3b8   :  { %1596 = vadd.xlane.f32.xlu2 %v1595_v51  ;;  %v1558_v25 = vpop.f32.mrf.mxu0 }
 0x429   :  { %v1583_v19 = vpop.xlane.xlu1 %1582 }
 0x42a   :  { %v1584_v27 = vmul.f32 0.001953125, %v1583_v19 }
 0x42b   :  { %v1597_v45 = vpop.xlane.xlu2 %1596 }
 0x42c   :  { %v1599_v54 = vmul.f32 %v1584_v27, %v1584_v27  ;;  %v1598_v39 = vmul.f32 0.001953125, %v1597_v45 }
 0x42e   :  { %v1600_v31 = vsub.f32 %v1598_v39, %v1599_v54 }
 0x430   :  { %v1601_v58 = vadd.f32 1e-05, %v1600_v31 }
 0x432   :  { %2203 = vrsqrt.f32 %v1601_v58  ;;  %vm1608_vm0 = vweird.f32 %v1601_v58 }
 0x438   :  { %v2204_v15 = vpop.eup %2203 }
 0x439   :  { %v1603_v22 = vmul.f32 %v2204_v15, %v1601_v58  ;;  %vm1609_vm15 = vweird.f32 %v2204_v15 }
 0x43a   :  { %vm1610_vm1 = vmor %vm1608_vm0, %vm1609_vm15 }
 0x43b   :  { %v1604_v6 = vmul.f32 %v2204_v15, %v1603_v22 }
 0x43d   :  { %v1605_v34 = vmul.f32 0.5, %v1604_v6 }
 0x43f   :  { %v1606_v53 = vsub.f32 1.5, %v1605_v34 }
 0x441   :  { %v1607_v8 = vmul.f32 %v2204_v15, %v1606_v53 }
 0x443   :  { %v1611_v35 = vsel %vm1610_vm1, %v2204_v15, %v1607_v8 }
 0x444   :  { %v1612_v49 = vmul.f32 %v1611_v35, %v1573_v21 }
 0x446   :  { %1617 = vperm.xlu0 %2199, %v1612_v49   ;;  %v1613_v50 = vmul.f32 %v1612_v49, %v1584_v27 }
 0x448   :  { %v1614_v13 = vsub.f32 %v1574_v1, %v1613_v50 }
 0x44e   :  { %1626 = vperm.xlu0 %2199, %v1614_v13  }
 0x4b8   :  { %v1618_v14 = vpop.permute.xlu0 %1617 }
 0x4b9   :  { %v1620_v57 = vmul.f32 %v1618_v14, %v1492_v30  ;;  %v1621_v29 = vmul.f32 %v1618_v14, %v1518_v59  ;;  %v1622_v11 = vmul.f32 %v1618_v14, %v1544_v26  ;;  %v1623_v20 = vmul.f32 %v1618_v14, %v1570_v24  ;;  %v2063_v26 = vld [vmem:[%s3306_s8] sm:$0xff] }
 0x4c0   :  { %v1627_v37 = vpop.permute.xlu0 %1626 }
 0x4c1   :  { %v1629_v3 = vadd.f32 %v1627_v37, %v1620_v57  ;;  %v1630_v40 = vadd.f32 %v1627_v37, %v1621_v29  ;;  %v1631_v42 = vadd.f32 %v1627_v37, %v1622_v11  ;;  %v1632_v9 = vadd.f32 %v1627_v37, %v1623_v20 }
 0x4c3   :  { %v1633_v18 = vmax.f32 %v1629_v3, 0.0  ;;  %v1634_v41 = vmax.f32 %v1630_v40, 0.0  ;;  %v1635_v16 = vmax.f32 %v1631_v42, 0.0  ;;  %v1636_v61 = vmax.f32 %v1632_v9, 0.0  ;;  %v1720_v3 = vld [vmem:[%s3307_s9] sm:$0xff] }
 0x4c5   :  { %v1639_v43 = vpack.c.bf16 %v1633_v18, %v1633_v18  ;;  %v1640_v7 = vpack.c.bf16 %v1634_v41, %v1634_v41  ;;  %v1641_v60 = vpack.c.bf16 %v1635_v16, %v1635_v16  ;;  %v1642_v38 = vpack.c.bf16 %v1636_v61, %v1636_v61  ;;  %v1722_v18 = vld [vmem:[%s3308_s10] sm:$0xff] }
 0x4c7   :  { %v1653_v52 = vsel %vm309_vm9, %v1639_v43, 0  ;;  %v1656_v30 = vsel %vm309_vm9, %v1640_v7, 0  ;;  %v1659_v59 = vsel %vm309_vm9, %v1641_v60, 0  ;;  %v1662_v56 = vsel %vm309_vm9, %v1642_v38, 0 }
 0x4c8   :  { %1671 = vmatpush.bf16.msrb.mxu3 %v1653_v52  ;;  %1685 = vmatpush.bf16.msrb.mxu1 %v1656_v30  ;;  %v1721_v52 = vld [vmem:[%s3307_s9 + $0x8] sm:$0xff]  ;;  %s2282_s9 = smov [#allocation6]  }
 0x4c9   :  { %1699 = vmatpush.bf16.msrb.mxu2 %v1659_v59 }
 0x4cb   :  { %2023 = vmatmul.msk.bf16.vlgmr.msrb.gmra.mxu3 %vm1648_vm2, %v2063_v26  ;;  %2024 = vmatmul.msk.bf16.vlgmr.msrb.gmra.mxu1 %vm1648_vm2, %v2063_v26 }
 0x4cc   :  { %1713 = vmatpush.bf16.msra.mxu3 %v1662_v56  ;;  %2025 = vmatmul.msk.bf16.vlgmr.msrb.gmra.mxu2 %vm1648_vm2, %v2063_v26 }
 0x4db   :  { %2026 = vmatmul.msk.bf16.vlgmr.msra.gmra.mxu3 %vm1648_vm2, %v2063_v26  ;;  %v1723_v26 = vld [vmem:[%s3308_s10 + $0x8] sm:$0xff]  ;;  %s1852_s10 = sshll.u32 %s2282_s9, 4  ;;  %s1853_s10 = int_to_ptr.vmem [resolvable:$true] %s1852_s10 }
 0x548   :  { %v3234_v48 = vpop.f32.mrf.mxu1 }
 0x549   :  { %v1737_v62 = vmul.f32 %v3234_v48, %v3234_v48 }
 0x54e   :  { %v3232_v32 = vpop.f32.mrf.mxu3 }
 0x54f   :  { %v1736_v47 = vmul.f32 %v3232_v32, %v3232_v32  ;;  %v3242_v2 = vpop.f32.mrf.mxu2  ;;  %v1724_v55 = vadd.f32 %v3234_v48, %v3232_v32 }
 0x550   :  { %v1738_v33 = vmul.f32 %v3242_v2, %v3242_v2  ;;  %v3249_v10 = vpop.f32.mrf.mxu1 }
 0x551   :  { %v1744_v28 = vadd.f32 %v1737_v62, %v1736_v47  ;;  %v1725_v24 = vadd.f32 %v1724_v55, %v3242_v2  ;;  %v1741_v17 = vmul.f32 %v3249_v10, %v3249_v10 }
 0x553   :  { %v1745_v63 = vadd.f32 %v1744_v28, %v1738_v33 }
 0x556   :  { %v3236_v44 = vpop.f32.mrf.mxu3 }
 0x557   :  { %v1729_v4 = vadd.f32 %v3249_v10, %v3236_v44  ;;  %v3258_v46 = vpop.f32.mrf.mxu2  ;;  %v1740_v0 = vmul.f32 %v3236_v44, %v3236_v44 }
 0x558   :  { %v1742_v45 = vmul.f32 %v3258_v46, %v3258_v46 }
 0x559   :  { %v1730_v51 = vadd.f32 %v1729_v4, %v3258_v46  ;;  %v1749_v27 = vadd.f32 %v1741_v17, %v1740_v0  ;;  %v2209_v17 = vld [vmem:[#allocation3] sm:$0xff] }
 0x55b   :  { %v1750_v39 = vadd.f32 %v1749_v27, %v1742_v45  ;;  %v2211_v45 = vld [vmem:[#allocation3 + $0x10] sm:$0xff] }
 0x55e   :  { %v3251_v23 = vpop.f32.mrf.mxu3 }
 0x55f   :  { %v1726_v12 = vadd.f32 %v1725_v24, %v3251_v23  ;;  %v1739_v36 = vmul.f32 %v3251_v23, %v3251_v23 }
 0x561   :  { %1727 = vadd.xlane.f32.xlu0 %v1726_v12  ;;  %v1746_v5 = vadd.f32 %v1745_v63, %v1739_v36 }
 0x563   :  { %1747 = vadd.xlane.f32.xlu1 %v1746_v5 }
 0x566   :  { %v3265_v25 = vpop.f32.mrf.mxu3 }
 0x567   :  { %v1731_v19 = vadd.f32 %v1730_v51, %v3265_v25  ;;  %v1743_v54 = vmul.f32 %v3265_v25, %v3265_v25 }
 0x569   :  { %1732 = vadd.xlane.f32.xlu2 %v1731_v19  ;;  %v1751_v31 = vadd.f32 %v1750_v39, %v1743_v54  ;;  %v2210_v19 = vld [vmem:[#allocation3 + $0x8] sm:$0xff]  ;;  %v2212_v39 = vld [vmem:[#allocation3 + $0x18] sm:$0xff] }
 0x571   :  { %1752 = vadd.xlane.f32.xlu2 %v1751_v31 }
 0x5d4   :  { %v1728_v58 = vpop.xlane.xlu0 %1727 }
 0x5d5   :  { %v1734_v15 = vmul.f32 0.001953125, %v1728_v58 }
 0x5d6   :  { %v1748_v22 = vpop.xlane.xlu1 %1747 }
 0x5d7   :  { %v1756_v6 = vmul.f32 %v1734_v15, %v1734_v15  ;;  %v1754_v34 = vmul.f32 0.001953125, %v1748_v22 }
 0x5d9   :  { %v1758_v53 = vsub.f32 %v1754_v34, %v1756_v6 }
 0x5db   :  { %v1760_v21 = vadd.f32 1e-05, %v1758_v53 }
 0x5dc   :  { %v1733_v8 = vpop.xlane.xlu2 %1732 }
 0x5dd   :  { %2205 = vrsqrt.f32 %v1760_v21  ;;  %v1735_v35 = vmul.f32 0.001953125, %v1733_v8  ;;  %vm1768_vm4 = vweird.f32 %v1760_v21 }
 0x5df   :  { %v1757_v13 = vmul.f32 %v1735_v35, %v1735_v35 }
 0x5e3   :  { %v2206_v49 = vpop.eup %2205 }
 0x5e4   :  { %v1763_v50 = vmul.f32 %v2206_v49, %v1760_v21  ;;  %v1753_v1 = vpop.xlane.xlu2 %1752  ;;  %vm1769_vm3 = vweird.f32 %v2206_v49 }
 0x5e5   :  { %v1755_v14 = vmul.f32 0.001953125, %v1753_v1  ;;  %vm1770_vm5 = vmor %vm1768_vm4, %vm1769_vm3 }
 0x5e6   :  { %v1764_v57 = vmul.f32 %v2206_v49, %v1763_v50  ;;  %v2213_v50 = vld [vmem:[#allocation3 + $0x20] sm:$0xff] }
 0x5e7   :  { %v1759_v29 = vsub.f32 %v1755_v14, %v1757_v13  ;;  %v2214_v13 = vld [vmem:[#allocation3 + $0x28] sm:$0xff] }
 0x5e8   :  { %v1765_v11 = vmul.f32 0.5, %v1764_v57  ;;  %v2215_v57 = vld [vmem:[#allocation3 + $0x30] sm:$0xff] }
 0x5e9   :  { %v1761_v20 = vadd.f32 1e-05, %v1759_v29 }
 0x5ea   :  { %v1766_v37 = vsub.f32 1.5, %v1765_v11  ;;  %v2216_v11 = vld [vmem:[#allocation3 + $0x38] sm:$0xff] }
 0x5eb   :  { %2207 = vrsqrt.f32 %v1761_v20  ;;  %vm1778_vm7 = vweird.f32 %v1761_v20 }
 0x5ec   :  { %v1767_v40 = vmul.f32 %v2206_v49, %v1766_v37 }
 0x5ee   :  { %v1771_v42 = vsel %vm1770_vm5, %v2206_v49, %v1767_v40 }
 0x5ef   :  { %v1782_v9 = vmul.f32 %v1771_v42, %v1720_v3 }
 0x5f1   :  { %v2208_v41 = vpop.eup %2207  ;;  %1790 = vperm.xlu1 %2183, %v1782_v9   ;;  %v1784_v16 = vmul.f32 %v1782_v9, %v1734_v15 }
 0x5f2   :  { %v1773_v61 = vmul.f32 %v2208_v41, %v1761_v20  ;;  %vm1779_vm6 = vweird.f32 %v2208_v41 }
 0x5f3   :  { %v1786_v43 = vsub.f32 %v1722_v18, %v1784_v16  ;;  %vm1780_vm8 = vmor %vm1778_vm7, %vm1779_vm6 }
 0x5f4   :  { %v1774_v7 = vmul.f32 %v2208_v41, %v1773_v61 }
 0x5f5   :  { %1808 = vperm.xlu0 %2199, %v1786_v43  }
 0x5f6   :  { %v1775_v60 = vmul.f32 0.5, %v1774_v7 }
 0x5f8   :  { %v1776_v38 = vsub.f32 1.5, %v1775_v60 }
 0x5fa   :  { %v1777_v30 = vmul.f32 %v2208_v41, %v1776_v38 }
 0x5fc   :  { %v1781_v59 = vsel %vm1780_vm8, %v2208_v41, %v1777_v30 }
 0x5fd   :  { %v1783_v56 = vmul.f32 %v1781_v59, %v1721_v52 }
 0x5ff   :  { %1795 = vperm.xlu2 %2200, %v1783_v56   ;;  %v1785_v47 = vmul.f32 %v1783_v56, %v1735_v35 }
 0x601   :  { %v1787_v62 = vsub.f32 %v1723_v26, %v1785_v47 }
 0x603   :  { %1813 = vperm.xlu1 %2183, %v1787_v62  }
 0x663   :  { %v1791_v55 = vpop.permute.xlu1 %1790 }
 0x664   :  { %v1798_v33 = vmul.f32 %v1791_v55, %v3232_v32  ;;  %v1799_v28 = vmul.f32 %v1791_v55, %v3234_v48  ;;  %v1800_v24 = vmul.f32 %v1791_v55, %v3242_v2  ;;  %v1801_v12 = vmul.f32 %v1791_v55, %v3251_v23  ;;  %v1796_v2 = vpop.permute.xlu2 %1795 }
 0x665   :  { %v1802_v23 = vmul.f32 %v1796_v2, %v3236_v44  ;;  %v1803_v22 = vmul.f32 %v1796_v2, %v3249_v10  ;;  %v1804_v6 = vmul.f32 %v1796_v2, %v3258_v46  ;;  %v1805_v34 = vmul.f32 %v1796_v2, %v3265_v25 }
 0x667   :  { %v1809_v36 = vpop.permute.xlu0 %1808 }
 0x668   :  { %v1816_v63 = vadd.f32 %v1809_v36, %v1798_v33  ;;  %v1817_v4 = vadd.f32 %v1809_v36, %v1799_v28  ;;  %v1818_v5 = vadd.f32 %v1809_v36, %v1800_v24  ;;  %v1819_v0 = vadd.f32 %v1809_v36, %v1801_v12 }
 0x66a   :  { %v1824_v51 = vadd.f32 %v2209_v17, %v1816_v63  ;;  %v1825_v27 = vadd.f32 %v2210_v19, %v1817_v4  ;;  %v1826_v54 = vadd.f32 %v2211_v45, %v1818_v5  ;;  %v1827_v31 = vadd.f32 %v2212_v39, %v1819_v0 }
 0x66c   :  { %v1832_v32 = vmax.f32 %v1824_v51, 0.0  ;;  %v1833_v58 = vmax.f32 %v1825_v27, 0.0  ;;  %v1834_v48 = vmax.f32 %v1826_v54, 0.0  ;;  %v1835_v15 = vmax.f32 %v1827_v31, 0.0 }
 0x66e   :  { %1840 = vst [vmem:[#allocation6] sm:$0xff] %v1832_v32 }
 0x66f   :  { %1841 = vst [vmem:[#allocation6 + $0x8] sm:$0xff] %v1833_v58 }
 0x670   :  { %1842 = vst [vmem:[#allocation6 + $0x10] sm:$0xff] %v1834_v48 }
 0x671   :  { %1843 = vst [vmem:[#allocation6 + $0x18] sm:$0xff] %v1835_v15 }
 0x675   :  { %v1814_v53 = vpop.permute.xlu1 %1813 }
 0x676   :  { %v1820_v21 = vadd.f32 %v1814_v53, %v1802_v23  ;;  %v1821_v8 = vadd.f32 %v1814_v53, %v1803_v22  ;;  %v1822_v35 = vadd.f32 %v1814_v53, %v1804_v6  ;;  %v1823_v49 = vadd.f32 %v1814_v53, %v1805_v34 }
 0x678   :  { %v1828_v1 = vadd.f32 %v2213_v50, %v1820_v21  ;;  %v1829_v14 = vadd.f32 %v2214_v13, %v1821_v8  ;;  %v1830_v29 = vadd.f32 %v2215_v57, %v1822_v35  ;;  %v1831_v20 = vadd.f32 %v2216_v11, %v1823_v49 }
 0x67a   :  { %v1836_v44 = vmax.f32 %v1828_v1, 0.0  ;;  %v1837_v37 = vmax.f32 %v1829_v14, 0.0  ;;  %v1838_v10 = vmax.f32 %v1830_v29, 0.0  ;;  %v1839_v46 = vmax.f32 %v1831_v20, 0.0 }
 0x67c   :  { %1844 = vst [vmem:[#allocation6 + $0x20] sm:$0xff] %v1836_v44 }
 0x67d   :  { %1845 = vst [vmem:[#allocation6 + $0x28] sm:$0xff] %v1837_v37 }
 0x67e   :  { %1846 = vst [vmem:[#allocation6 + $0x30] sm:$0xff] %v1838_v10 }
 0x67f   :  { %1847 = vst [vmem:[#allocation6 + $0x38] sm:$0xff] %v1839_v46 }
 0x680   :  { %1860 = dma.vmem_to_hbm [thread:$0]  %s1853_s10, 1024, %s1855_s30, [#allocation5], %s2270_s22, %s2270_s22, %s2271_s23  }
 0x681   :  { %2267 = dma.done.wait [#allocation5], 1024  }
 0x682   :  { %2268 = vsyncadd [#allocation5], 4294966272 }
 0x683   :  { %1865 = vsyncpa [#allocation4], 1 }
 0x684   :  { %1866 = vsyncpa [#allocation5], 1 }

</bundles_post_ra>
